<compile_context>
chip_gen: v7x
topology: tpu7x:2x2x1
jax: 0.10.0
libtpu: 0.0.40
codegen_flags: <defaults>
</compile_context>

<pallas_src>
import functools

import jax
import jax.numpy as jnp
import numpy as np
from jax.experimental import pallas as pl
from jax.experimental.pallas import tpu as pltpu


# ----------------------------------------------------------------------------- kernel helpers
def _project(x_q, x_kv, wq_ref, wkv_ref, q_s, kT_s, v_s):
    """Once per batch: project Q/K/V into bf16 VMEM scratch (K stored pre-transposed)."""
    C = q_s.shape[-1]
    q_s[...] = jnp.dot(x_q, wq_ref[...],
                       preferred_element_type=jnp.float32).astype(jnp.bfloat16)
    kv = jnp.dot(x_kv, wkv_ref[...], preferred_element_type=jnp.float32)      # (N, 2C) f32
    # K stored (C, N): per-head score matmul becomes (TQ, D) x (D, N) with no per-tile
    # transpose; the single per-batch transpose amortises over nq * H uses.
    kT_s[...] = kv[:, :C].T.astype(jnp.bfloat16)
    v_s[...] = kv[:, C:].astype(jnp.bfloat16)


def _attention_tile(q, kT_s, v_s, perm_ref, o_ref, num_heads):
    """softmax(q k^T) v for every head, assembled into one (TQ, C) value in the reference
    column order (d*H + h) via a constant permutation matmul -> single lane-dense store."""
    q_tile, C = q.shape
    D = C // num_heads
    acc = jnp.zeros((q_tile, C), jnp.float32)
    for h in range(num_heads):
        qh = q[:, h * D:(h + 1) * D]                       # (TQ, D) bf16 (scale pre-folded)
        khT = kT_s[h * D:(h + 1) * D, :]                   # (D,  N) bf16 (pre-transposed)
        vh = v_s[:, h * D:(h + 1) * D]                     # (N,  D) bf16
        s = jnp.dot(qh, khT, preferred_element_type=jnp.float32)              # (TQ, N) f32
        s = s - jnp.max(s, axis=-1, keepdims=True)
        e = jnp.exp(s)                                     # bounded by 1.0
        denom = jnp.sum(e, axis=-1, keepdims=True)         # f32 (TQ, 1)
        # Deferred normalisation: PV first (bf16 e), then scale the small (TQ, D) result.
        oh = jnp.dot(e.astype(jnp.bfloat16), vh, preferred_element_type=jnp.float32)
        oh = oh * pl.reciprocal(denom, approx=True)
        # Scatter head columns d -> d*H + h with the constant permutation slice; accumulate
        # all heads so the output store below is one full-width (TQ, C) store.
        acc = acc + jnp.dot(oh, perm_ref[h * D:(h + 1) * D, :],
                            preferred_element_type=jnp.float32)
    o_ref[0] = acc.astype(o_ref.dtype)                     # single lane-dense store


def _sdpa_self_kernel(x_ref, wq_ref, wkv_ref, perm_ref, o_ref, q_s, kT_s, v_s, *,
                      num_heads, q_tile):
    qi = pl.program_id(1)

    @pl.when(qi == 0)                  # once per batch: one x block feeds both Q and K/V
    def _():
        xb = x_ref[0]                  # already bf16 (cast in the wrapper)
        _project(xb, xb, wq_ref, wkv_ref, q_s, kT_s, v_s)

    row0 = pl.multiple_of(qi * q_tile, q_tile)
    _attention_tile(q_s[pl.ds(row0, q_tile), :], kT_s, v_s, perm_ref, o_ref, num_heads)


def _sdpa_cross_kernel(xq_ref, xkv_ref, wq_ref, wkv_ref, perm_ref, o_ref, q_s, kT_s, v_s, *,
                       num_heads, q_tile):
    qi = pl.program_id(1)

    @pl.when(qi == 0)
    def _():
        _project(xq_ref[0], xkv_ref[0], wq_ref, wkv_ref, q_s, kT_s, v_s)

    row0 = pl.multiple_of(qi * q_tile, q_tile)
    _attention_tile(q_s[pl.ds(row0, q_tile), :], kT_s, v_s, perm_ref, o_ref, num_heads)


# ----------------------------------------------------------------------------- wrapper
def scale_dot_product_attention(x, wq, wkv, *, num_heads, attn_mode='self', q_tile=None):
    """Forward pass of ScaleDotProductAttention.

    x: (B, N, C); wq: (C, C); wkv: (C, 2C)  -- weights pre-transposed (y = x @ w), no bias.
    """
    B, N, C = x.shape
    assert C % num_heads == 0, f'dim {C} must be divisible by num_heads {num_heads}'
    D = C // num_heads
    halfB = B // 2

    if q_tile is None:
        if N <= 256:
            q_tile = N                     # small sequences: one tile per batch
        else:
            q_tile = N
            for t in (256, 128, 64, 32, 16, 8):   # 256 fills the v6e/v7x 256-wide MXU rows
                if N % t == 0:
                    q_tile = t
                    break
    assert N % q_tile == 0, f'seq len {N} must be divisible by q_tile {q_tile}'
    nq = N // q_tile

    out_dtype = x.dtype
    # bf16 x: halves the x DMA bytes and the double-buffered resident input block; the kernel
    # computes in bf16 anyway so there is no accuracy change.
    x_b = x if x.dtype == jnp.bfloat16 else x.astype(jnp.bfloat16)
    # Fold the 1/sqrt(C) score scale into Wq (free) and cast weights to bf16 once.
    wq_b = (wq * (1.0 / (C ** 0.5))).astype(jnp.bfloat16)
    wkv_b = wkv.astype(jnp.bfloat16)

    # Constant permutation matrix: kernel-internal head-major column h*D+d -> reference
    # column d*H+h.  f32 so the placement is exact (entries are 0/1); cost is negligible
    # given the huge MXU slack at D = C/H.
    rows = np.arange(C)
    perm_np = np.zeros((C, C), np.float32)
    perm_np[rows, (rows % D) * num_heads + rows // D] = 1.0
    perm = jnp.asarray(perm_np, dtype=jnp.float32)

    w_specs = [
        pl.BlockSpec((C, C), lambda b, qi: (0, 0)),        # constant block idx -> resident
        pl.BlockSpec((C, 2 * C), lambda b, qi: (0, 0)),
        pl.BlockSpec((C, C), lambda b, qi: (0, 0)),        # permutation matrix
    ]
    out_spec = pl.BlockSpec((1, q_tile, C), lambda b, qi: (b, qi, 0))
    scratch = [
        pltpu.VMEM((N, C), jnp.bfloat16),   # Q (scale pre-folded)
        pltpu.VMEM((C, N), jnp.bfloat16),   # K^T (pre-transposed once per batch)
        pltpu.VMEM((N, C), jnp.bfloat16),   # V
    ]

    if attn_mode == 'self':
        kernel = functools.partial(_sdpa_self_kernel, num_heads=num_heads, q_tile=q_tile)
        in_specs = [pl.BlockSpec((1, N, C), lambda b, qi: (b, 0, 0))] + w_specs
        args = (x_b, wq_b, wkv_b, perm)
        n_x_blocks = 1
    elif attn_mode == 'cross':
        kernel = functools.partial(_sdpa_cross_kernel, num_heads=num_heads, q_tile=q_tile)
        in_specs = [
            pl.BlockSpec((1, N, C), lambda b, qi: (b, 0, 0)),                 # Q source
            pl.BlockSpec((1, N, C), lambda b, qi: ((b + halfB) % B, 0, 0)),   # K/V source
        ] + w_specs
        args = (x_b, x_b, wq_b, wkv_b, perm)
        n_x_blocks = 2
    else:
        raise ValueError(f'Invalid attention mode: {attn_mode}')

    # Explicit VMEM budget with headroom (scoped default is only 32 MiB; v7x has 64 MiB total).
    vmem_est = (
        2 * n_x_blocks * N * C * 2                 # double-buffered bf16 x block(s)
        + 2 * (C * C + C * 2 * C) * 2              # double-buffered bf16 weights
        + 2 * C * C * 4                            # double-buffered f32 permutation matrix
        + 3 * N * C * 2                            # Q / K^T / V bf16 scratch
        + 2 * q_tile * C * 4                       # double-buffered f32 output block
        + 4 * q_tile * N * 4                       # live f32 score/exp tiles + headroom
        + 2 * q_tile * C * 4                       # accumulator / misc headroom
    )
    vmem_limit = int(min(120 * 1024 * 1024, max(32 * 1024 * 1024, 2 * vmem_est)))

    return pl.pallas_call(
        kernel,
        out_shape=jax.ShapeDtypeStruct((B, N, C), out_dtype),
        grid=(B, nq),
        in_specs=in_specs,
        out_specs=out_spec,
        scratch_shapes=scratch,
        compiler_params=pltpu.CompilerParams(
            dimension_semantics=("parallel", "arbitrary"),
            vmem_limit_bytes=vmem_limit),
    )(*args)


# ----------------------------------------------------------------------------- pure-JAX reference
def _reference(x, wq, wkv, *, num_heads, attn_mode):
    B, N, C = x.shape
    D = C // num_heads
    halfB = B // 2
    q = (x @ wq).reshape(B, N, num_heads, D)
    kv = (x @ wkv).reshape(B, N, 2, num_heads, D)
    k, v = kv[:, :, 0], kv[:, :, 1]
    if attn_mode == 'cross':
        k = jnp.concatenate([k[halfB:], k[:halfB]], axis=0)
        v = jnp.concatenate([v[halfB:], v[:halfB]], axis=0)
    s = jnp.einsum('bnhd,bmhd->bhnm', q, k) / (C ** 0.5)
    p = jax.nn.softmax(s, axis=-1)
    o = jnp.einsum('bhnm,bmhd->bndh', p, v)        # (B, N, D, H): columns d*H + h
    return o.reshape(B, N, C)


# ----------------------------------------------------------------------------- main
if __name__ == "__main__":
    B, N, C, H = 2, 64, 128, 4
    key = jax.random.PRNGKey(0)
    kx, kq, kkv = jax.random.split(key, 3)
    x = jax.random.normal(kx, (B, N, C), jnp.float32)
    wq = 0.05 * jax.random.normal(kq, (C, C), jnp.float32)
    wkv = 0.05 * jax.random.normal(kkv, (C, 2 * C), jnp.float32)

    for mode in ("self", "cross"):
        out = jax.block_until_ready(
            scale_dot_product_attention(x, wq, wkv, num_heads=H, attn_mode=mode))
        ref = jax.block_until_ready(
            _reference(x, wq, wkv, num_heads=H, attn_mode=mode))
        # bf16 matmul operands + approx reciprocal vs f32 reference -> relaxed tolerance.
        np.testing.assert_allclose(np.asarray(out), np.asarray(ref), rtol=3e-2, atol=5e-3)

    print("KERNEL_OK")
</pallas_src>

<mosaic_0001>
module attributes {stable_mosaic.version = 11 : i64} {
  func.func @_sdpa_self_kernel(%arg0: i32, %arg1: i32, %arg2: memref<1x64x128xbf16, #tpu.memory_space<vmem>>, %arg3: memref<128x128xbf16, #tpu.memory_space<vmem>>, %arg4: memref<128x256xbf16, #tpu.memory_space<vmem>>, %arg5: memref<128x128xf32, #tpu.memory_space<vmem>>, %arg6: memref<1x64x128xf32, #tpu.memory_space<vmem>>, %arg7: memref<64x128xbf16, #tpu.memory_space<vmem>>, %arg8: memref<128x64xbf16, #tpu.memory_space<vmem>>, %arg9: memref<64x128xbf16, #tpu.memory_space<vmem>>) attributes {dimension_semantics = [#tpu.dimension_semantics<parallel>, #tpu.dimension_semantics<arbitrary>], iteration_bounds = array<i64: 2, 1>, scalar_prefetch = 0 : i64, scratch_operands = 3 : i64, tpu.core_type = #tpu.core_type<tc>, window_params = [{transform_indices = @transform_0, window_bounds = array<i64: 1, 64, 128>}, {pipeline_mode = #tpu.pipeline_mode<synchronous>, transform_indices = @transform_1, window_bounds = array<i64: 128, 128>}, {pipeline_mode = #tpu.pipeline_mode<synchronous>, transform_indices = @transform_2, window_bounds = array<i64: 128, 256>}, {pipeline_mode = #tpu.pipeline_mode<synchronous>, transform_indices = @transform_3, window_bounds = array<i64: 128, 128>}, {transform_indices = @transform_4, window_bounds = array<i64: 1, 64, 128>}]} {
    %c0_i32 = arith.constant 0 : i32
    %0 = arith.cmpi eq, %arg1, %c0_i32 : i32
    %1 = arith.extui %0 : i1 to i32
    %c0_i32_0 = arith.constant 0 : i32
    %2 = arith.cmpi ne, %1, %c0_i32_0 : i32
    scf.if %2 {
      %c0_45 = arith.constant 0 : index
      %c0_46 = arith.constant 0 : index
      %c0_47 = arith.constant 0 : index
      %87 = vector.load %arg2[%c0_45, %c0_46, %c0_47] : memref<1x64x128xbf16, #tpu.memory_space<vmem>>, vector<1x64x128xbf16>
      %88 = vector.shape_cast %87 : vector<1x64x128xbf16> to vector<64x128xbf16>
      %c0_48 = arith.constant 0 : index
      %c0_49 = arith.constant 0 : index
      %89 = vector.load %arg3[%c0_48, %c0_49] : memref<128x128xbf16, #tpu.memory_space<vmem>>, vector<128x128xbf16>
      %cst_50 = arith.constant dense<0.000000e+00> : vector<64x128xf32>
      %90 = tpu.matmul %88, %89, %cst_50 {dimension_numbers = #tpu.dot_dimension_numbers<[1], [0], [0], [1], [0, 0, 1, 1], [], []>} : vector<64x128xbf16>, vector<128x128xbf16>, vector<64x128xf32> -> vector<64x128xf32>
      %91 = arith.truncf %90 : vector<64x128xf32> to vector<64x128xbf16>
      %c0_51 = arith.constant 0 : index
      %c0_52 = arith.constant 0 : index
      %92 = vector.load %arg7[%c0_51, %c0_52] : memref<64x128xbf16, #tpu.memory_space<vmem>>, vector<64x128xbf16>
      tpu.vector_store %arg7[%c0_51, %c0_52], %91 {strides = array<i32>} : memref<64x128xbf16, #tpu.memory_space<vmem>>, vector<64x128xbf16>,
      %c0_53 = arith.constant 0 : index
      %c0_54 = arith.constant 0 : index
      %93 = vector.load %arg4[%c0_53, %c0_54] : memref<128x256xbf16, #tpu.memory_space<vmem>>, vector<128x256xbf16>
      %cst_55 = arith.constant dense<0.000000e+00> : vector<64x256xf32>
      %94 = tpu.matmul %88, %93, %cst_55 {dimension_numbers = #tpu.dot_dimension_numbers<[1], [0], [0], [1], [0, 0, 1, 1], [], []>} : vector<64x128xbf16>, vector<128x256xbf16>, vector<64x256xf32> -> vector<64x256xf32>
      %95 = vector.extract_strided_slice %94 {offsets = [0, 0], sizes = [64, 128], strides = [1, 1]} : vector<64x256xf32> to vector<64x128xf32>
      %96 = tpu.transpose %95, [1, 0] : vector<64x128xf32> -> vector<128x64xf32>
      %97 = arith.truncf %96 : vector<128x64xf32> to vector<128x64xbf16>
      %c0_56 = arith.constant 0 : index
      %c0_57 = arith.constant 0 : index
      %98 = vector.load %arg8[%c0_56, %c0_57] : memref<128x64xbf16, #tpu.memory_space<vmem>>, vector<128x64xbf16>
      tpu.vector_store %arg8[%c0_56, %c0_57], %97 {strides = array<i32>} : memref<128x64xbf16, #tpu.memory_space<vmem>>, vector<128x64xbf16>,
      %99 = vector.extract_strided_slice %94 {offsets = [0, 128], sizes = [64, 128], strides = [1, 1]} : vector<64x256xf32> to vector<64x128xf32>
      %100 = arith.truncf %99 : vector<64x128xf32> to vector<64x128xbf16>
      %c0_58 = arith.constant 0 : index
      %c0_59 = arith.constant 0 : index
      %101 = vector.load %arg9[%c0_58, %c0_59] : memref<64x128xbf16, #tpu.memory_space<vmem>>, vector<64x128xbf16>
      tpu.vector_store %arg9[%c0_58, %c0_59], %100 {strides = array<i32>} : memref<64x128xbf16, #tpu.memory_space<vmem>>, vector<64x128xbf16>,
    } else {
    }
    %c64_i32 = arith.constant 64 : i32
    %3 = arith.muli %arg1, %c64_i32 : i32
    %4 = tpu.assume_multiple %3, 64 : i32
    %5 = arith.index_cast %4 : i32 to index
    %c0 = arith.constant 0 : index
    %6 = vector.load %arg7[%5, %c0] : memref<64x128xbf16, #tpu.memory_space<vmem>>, vector<64x128xbf16>
    %cst = arith.constant 0.000000e+00 : f32
    %7 = vector.broadcast %cst : f32 to vector<64x128xf32>
    %8 = vector.extract_strided_slice %6 {offsets = [0, 0], sizes = [64, 32], strides = [1, 1]} : vector<64x128xbf16> to vector<64x32xbf16>
    %c0_1 = arith.constant 0 : index
    %c0_2 = arith.constant 0 : index
    %9 = vector.load %arg8[%c0_1, %c0_2] : memref<128x64xbf16, #tpu.memory_space<vmem>>, vector<32x64xbf16>
    %c0_3 = arith.constant 0 : index
    %c0_4 = arith.constant 0 : index
    %10 = vector.load %arg9[%c0_3, %c0_4] : memref<64x128xbf16, #tpu.memory_space<vmem>>, vector<64x32xbf16>
    %cst_5 = arith.constant dense<0.000000e+00> : vector<64x64xf32>
    %11 = tpu.matmul %8, %9, %cst_5 {dimension_numbers = #tpu.dot_dimension_numbers<[1], [0], [0], [1], [0, 0, 1, 1], [], []>} : vector<64x32xbf16>, vector<32x64xbf16>, vector<64x64xf32> -> vector<64x64xf32>
    %cst_6 = arith.constant dense<0xFF800000> : vector<64xf32>
    %12 = vector.multi_reduction <maximumf>, %11, %cst_6 [1] : vector<64x64xf32> to vector<64xf32>
    %13 = vector.shape_cast %12 : vector<64xf32> to vector<64x1xf32>
    %14 = vector.broadcast %13 : vector<64x1xf32> to vector<64x64xf32>
    %15 = arith.subf %11, %14 : vector<64x64xf32>
    %16 = math.exp %15 : vector<64x64xf32>
    %cst_7 = arith.constant dense<0.000000e+00> : vector<64xf32>
    %17 = vector.multi_reduction <add>, %16, %cst_7 [1] : vector<64x64xf32> to vector<64xf32>
    %18 = vector.shape_cast %17 : vector<64xf32> to vector<64x1xf32>
    %19 = arith.truncf %16 : vector<64x64xf32> to vector<64x64xbf16>
    %cst_8 = arith.constant dense<0.000000e+00> : vector<64x32xf32>
    %20 = tpu.matmul %19, %10, %cst_8 {dimension_numbers = #tpu.dot_dimension_numbers<[1], [0], [0], [1], [0, 0, 1, 1], [], []>} : vector<64x64xbf16>, vector<64x32xbf16>, vector<64x32xf32> -> vector<64x32xf32>
    %21 = tpu.reciprocal %18 {approx = true} : vector<64x1xf32> -> vector<64x1xf32>
    %22 = vector.broadcast %21 : vector<64x1xf32> to vector<64x32xf32>
    %23 = arith.mulf %20, %22 : vector<64x32xf32>
    %c0_9 = arith.constant 0 : index
    %c0_10 = arith.constant 0 : index
    %24 = vector.load %arg5[%c0_9, %c0_10] : memref<128x128xf32, #tpu.memory_space<vmem>>, vector<32x128xf32>
    %cst_11 = arith.constant dense<0.000000e+00> : vector<64x128xf32>
    %25 = tpu.matmul %23, %24, %cst_11 {dimension_numbers = #tpu.dot_dimension_numbers<[1], [0], [0], [1], [0, 0, 1, 1], [], []>} : vector<64x32xf32>, vector<32x128xf32>, vector<64x128xf32> -> vector<64x128xf32>
    %26 = arith.addf %7, %25 : vector<64x128xf32>
    %27 = vector.extract_strided_slice %6 {offsets = [0, 32], sizes = [64, 32], strides = [1, 1]} : vector<64x128xbf16> to vector<64x32xbf16>
    %c32 = arith.constant 32 : index
    %c0_12 = arith.constant 0 : index
    %28 = vector.load %arg8[%c32, %c0_12] : memref<128x64xbf16, #tpu.memory_space<vmem>>, vector<32x64xbf16>
    %c0_13 = arith.constant 0 : index
    %c32_14 = arith.constant 32 : index
    %29 = vector.load %arg9[%c0_13, %c32_14] : memref<64x128xbf16, #tpu.memory_space<vmem>>, vector<64x32xbf16>
    %cst_15 = arith.constant dense<0.000000e+00> : vector<64x64xf32>
    %30 = tpu.matmul %27, %28, %cst_15 {dimension_numbers = #tpu.dot_dimension_numbers<[1], [0], [0], [1], [0, 0, 1, 1], [], []>} : vector<64x32xbf16>, vector<32x64xbf16>, vector<64x64xf32> -> vector<64x64xf32>
    %cst_16 = arith.constant dense<0xFF800000> : vector<64xf32>
    %31 = vector.multi_reduction <maximumf>, %30, %cst_16 [1] : vector<64x64xf32> to vector<64xf32>
    %32 = vector.shape_cast %31 : vector<64xf32> to vector<64x1xf32>
    %33 = vector.broadcast %32 : vector<64x1xf32> to vector<64x64xf32>
    %34 = arith.subf %30, %33 : vector<64x64xf32>
    %35 = math.exp %34 : vector<64x64xf32>
    %cst_17 = arith.constant dense<0.000000e+00> : vector<64xf32>
    %36 = vector.multi_reduction <add>, %35, %cst_17 [1] : vector<64x64xf32> to vector<64xf32>
    %37 = vector.shape_cast %36 : vector<64xf32> to vector<64x1xf32>
    %38 = arith.truncf %35 : vector<64x64xf32> to vector<64x64xbf16>
    %cst_18 = arith.constant dense<0.000000e+00> : vector<64x32xf32>
    %39 = tpu.matmul %38, %29, %cst_18 {dimension_numbers = #tpu.dot_dimension_numbers<[1], [0], [0], [1], [0, 0, 1, 1], [], []>} : vector<64x64xbf16>, vector<64x32xbf16>, vector<64x32xf32> -> vector<64x32xf32>
    %40 = tpu.reciprocal %37 {approx = true} : vector<64x1xf32> -> vector<64x1xf32>
    %41 = vector.broadcast %40 : vector<64x1xf32> to vector<64x32xf32>
    %42 = arith.mulf %39, %41 : vector<64x32xf32>
    %c32_19 = arith.constant 32 : index
    %c0_20 = arith.constant 0 : index
    %43 = vector.load %arg5[%c32_19, %c0_20] : memref<128x128xf32, #tpu.memory_space<vmem>>, vector<32x128xf32>
    %cst_21 = arith.constant dense<0.000000e+00> : vector<64x128xf32>
    %44 = tpu.matmul %42, %43, %cst_21 {dimension_numbers = #tpu.dot_dimension_numbers<[1], [0], [0], [1], [0, 0, 1, 1], [], []>} : vector<64x32xf32>, vector<32x128xf32>, vector<64x128xf32> -> vector<64x128xf32>
    %45 = arith.addf %26, %44 : vector<64x128xf32>
    %46 = vector.extract_strided_slice %6 {offsets = [0, 64], sizes = [64, 32], strides = [1, 1]} : vector<64x128xbf16> to vector<64x32xbf16>
    %c64 = arith.constant 64 : index
    %c0_22 = arith.constant 0 : index
    %47 = vector.load %arg8[%c64, %c0_22] : memref<128x64xbf16, #tpu.memory_space<vmem>>, vector<32x64xbf16>
    %c0_23 = arith.constant 0 : index
    %c64_24 = arith.constant 64 : index
    %48 = vector.load %arg9[%c0_23, %c64_24] : memref<64x128xbf16, #tpu.memory_space<vmem>>, vector<64x32xbf16>
    %cst_25 = arith.constant dense<0.000000e+00> : vector<64x64xf32>
    %49 = tpu.matmul %46, %47, %cst_25 {dimension_numbers = #tpu.dot_dimension_numbers<[1], [0], [0], [1], [0, 0, 1, 1], [], []>} : vector<64x32xbf16>, vector<32x64xbf16>, vector<64x64xf32> -> vector<64x64xf32>
    %cst_26 = arith.constant dense<0xFF800000> : vector<64xf32>
    %50 = vector.multi_reduction <maximumf>, %49, %cst_26 [1] : vector<64x64xf32> to vector<64xf32>
    %51 = vector.shape_cast %50 : vector<64xf32> to vector<64x1xf32>
    %52 = vector.broadcast %51 : vector<64x1xf32> to vector<64x64xf32>
    %53 = arith.subf %49, %52 : vector<64x64xf32>
    %54 = math.exp %53 : vector<64x64xf32>
    %cst_27 = arith.constant dense<0.000000e+00> : vector<64xf32>
    %55 = vector.multi_reduction <add>, %54, %cst_27 [1] : vector<64x64xf32> to vector<64xf32>
    %56 = vector.shape_cast %55 : vector<64xf32> to vector<64x1xf32>
    %57 = arith.truncf %54 : vector<64x64xf32> to vector<64x64xbf16>
    %cst_28 = arith.constant dense<0.000000e+00> : vector<64x32xf32>
    %58 = tpu.matmul %57, %48, %cst_28 {dimension_numbers = #tpu.dot_dimension_numbers<[1], [0], [0], [1], [0, 0, 1, 1], [], []>} : vector<64x64xbf16>, vector<64x32xbf16>, vector<64x32xf32> -> vector<64x32xf32>
    %59 = tpu.reciprocal %56 {approx = true} : vector<64x1xf32> -> vector<64x1xf32>
    %60 = vector.broadcast %59 : vector<64x1xf32> to vector<64x32xf32>
    %61 = arith.mulf %58, %60 : vector<64x32xf32>
    %c64_29 = arith.constant 64 : index
    %c0_30 = arith.constant 0 : index
    %62 = vector.load %arg5[%c64_29, %c0_30] : memref<128x128xf32, #tpu.memory_space<vmem>>, vector<32x128xf32>
    %cst_31 = arith.constant dense<0.000000e+00> : vector<64x128xf32>
    %63 = tpu.matmul %61, %62, %cst_31 {dimension_numbers = #tpu.dot_dimension_numbers<[1], [0], [0], [1], [0, 0, 1, 1], [], []>} : vector<64x32xf32>, vector<32x128xf32>, vector<64x128xf32> -> vector<64x128xf32>
    %64 = arith.addf %45, %63 : vector<64x128xf32>
    %65 = vector.extract_strided_slice %6 {offsets = [0, 96], sizes = [64, 32], strides = [1, 1]} : vector<64x128xbf16> to vector<64x32xbf16>
    %c96 = arith.constant 96 : index
    %c0_32 = arith.constant 0 : index
    %66 = vector.load %arg8[%c96, %c0_32] : memref<128x64xbf16, #tpu.memory_space<vmem>>, vector<32x64xbf16>
    %c0_33 = arith.constant 0 : index
    %c96_34 = arith.constant 96 : index
    %67 = vector.load %arg9[%c0_33, %c96_34] : memref<64x128xbf16, #tpu.memory_space<vmem>>, vector<64x32xbf16>
    %cst_35 = arith.constant dense<0.000000e+00> : vector<64x64xf32>
    %68 = tpu.matmul %65, %66, %cst_35 {dimension_numbers = #tpu.dot_dimension_numbers<[1], [0], [0], [1], [0, 0, 1, 1], [], []>} : vector<64x32xbf16>, vector<32x64xbf16>, vector<64x64xf32> -> vector<64x64xf32>
    %cst_36 = arith.constant dense<0xFF800000> : vector<64xf32>
    %69 = vector.multi_reduction <maximumf>, %68, %cst_36 [1] : vector<64x64xf32> to vector<64xf32>
    %70 = vector.shape_cast %69 : vector<64xf32> to vector<64x1xf32>
    %71 = vector.broadcast %70 : vector<64x1xf32> to vector<64x64xf32>
    %72 = arith.subf %68, %71 : vector<64x64xf32>
    %73 = math.exp %72 : vector<64x64xf32>
    %cst_37 = arith.constant dense<0.000000e+00> : vector<64xf32>
    %74 = vector.multi_reduction <add>, %73, %cst_37 [1] : vector<64x64xf32> to vector<64xf32>
    %75 = vector.shape_cast %74 : vector<64xf32> to vector<64x1xf32>
    %76 = arith.truncf %73 : vector<64x64xf32> to vector<64x64xbf16>
    %cst_38 = arith.constant dense<0.000000e+00> : vector<64x32xf32>
    %77 = tpu.matmul %76, %67, %cst_38 {dimension_numbers = #tpu.dot_dimension_numbers<[1], [0], [0], [1], [0, 0, 1, 1], [], []>} : vector<64x64xbf16>, vector<64x32xbf16>, vector<64x32xf32> -> vector<64x32xf32>
    %78 = tpu.reciprocal %75 {approx = true} : vector<64x1xf32> -> vector<64x1xf32>
    %79 = vector.broadcast %78 : vector<64x1xf32> to vector<64x32xf32>
    %80 = arith.mulf %77, %79 : vector<64x32xf32>
    %c96_39 = arith.constant 96 : index
    %c0_40 = arith.constant 0 : index
    %81 = vector.load %arg5[%c96_39, %c0_40] : memref<128x128xf32, #tpu.memory_space<vmem>>, vector<32x128xf32>
    %cst_41 = arith.constant dense<0.000000e+00> : vector<64x128xf32>
    %82 = tpu.matmul %80, %81, %cst_41 {dimension_numbers = #tpu.dot_dimension_numbers<[1], [0], [0], [1], [0, 0, 1, 1], [], []>} : vector<64x32xf32>, vector<32x128xf32>, vector<64x128xf32> -> vector<64x128xf32>
    %83 = arith.addf %64, %82 : vector<64x128xf32>
    %c0_42 = arith.constant 0 : index
    %c0_43 = arith.constant 0 : index
    %c0_44 = arith.constant 0 : index
    %84 = vector.load %arg6[%c0_42, %c0_43, %c0_44] : memref<1x64x128xf32, #tpu.memory_space<vmem>>, vector<1x64x128xf32>
    %85 = vector.shape_cast %84 : vector<1x64x128xf32> to vector<64x128xf32>
    %86 = vector.shape_cast %83 : vector<64x128xf32> to vector<1x64x128xf32>
    tpu.vector_store %arg6[%c0_42, %c0_43, %c0_44], %86 {strides = array<i32>} : memref<1x64x128xf32, #tpu.memory_space<vmem>>, vector<1x64x128xf32>,
    return
  }
  func.func @transform_0(%arg0: i32, %arg1: i32) -> (i32, i32, i32) {
    %c0_i32 = arith.constant 0 : i32
    %c0_i32_0 = arith.constant 0 : i32
    %c0_i32_1 = arith.constant 0 : i32
    return %arg0, %c0_i32, %c0_i32_0 : i32, i32, i32
  }
  func.func @transform_1(%arg0: i32, %arg1: i32) -> (i32, i32) {
    %c0_i32 = arith.constant 0 : i32
    %c0_i32_0 = arith.constant 0 : i32
    %c0_i32_1 = arith.constant 0 : i32
    return %c0_i32, %c0_i32_0 : i32, i32
  }
  func.func @transform_2(%arg0: i32, %arg1: i32) -> (i32, i32) {
    %c0_i32 = arith.constant 0 : i32
    %c0_i32_0 = arith.constant 0 : i32
    %c0_i32_1 = arith.constant 0 : i32
    return %c0_i32, %c0_i32_0 : i32, i32
  }
  func.func @transform_3(%arg0: i32, %arg1: i32) -> (i32, i32) {
    %c0_i32 = arith.constant 0 : i32
    %c0_i32_0 = arith.constant 0 : i32
    %c0_i32_1 = arith.constant 0 : i32
    return %c0_i32, %c0_i32_0 : i32, i32
  }
  func.func @transform_4(%arg0: i32, %arg1: i32) -> (i32, i32, i32) {
    %c0_i32 = arith.constant 0 : i32
    %c0_i32_0 = arith.constant 0 : i32
    return %arg0, %arg1, %c0_i32 : i32, i32, i32
  }
}

</mosaic_0001>

<bundles_post_ra>
// kernel: tpu_custom_call.1
= control target key start
LH: loop header
LB: loop body
LE: loop exit
PB: predicated region body
PF: predicated region fallthrough
CT: control target
= control target key end

     0   :  { %s4180_s0 = inlined_call_operand.hbm [shape: bf16[2,64,128], index: 0, kind: input, shape index: {}]   ;;  %s4181_s1 = inlined_call_operand.hbm [shape: bf16[128,128], index: 1, kind: input, shape index: {}]   ;;  %s4182_s2 = inlined_call_operand.hbm [shape: bf16[128,256], index: 2, kind: input, shape index: {}]   ;;  %s4183_s3 = inlined_call_operand.hbm [shape: f32[128,128], index: 3, kind: input, shape index: {}]   ;;  %s4184_s4 = inlined_call_operand.hbm [shape: f32[2,64,128], index: 4, kind: output, shape index: {}]  }
   0x1   :  { %4191 = sst [smem:[#allocation18_spill]] %s4181_s1 }
   0x2   :  { %9 = vsyncpa [#allocation6], 0 }
   0x3   :  { %11 = vsyncpa [#allocation6 + $0x1], 0 }
   0x4   :  { %12 = vsyncpa [#allocation9], 0 }
   0x5   :  { %13 = vsyncpa [#allocation12], 0 }
   0x6   :  { %14 = vsyncpa [#allocation7], 0 }
   0x7   :  { %16 = vsyncpa [#allocation7 + $0x1], 0  ;;  %s3458_s15 = smov 0   ;;  %s3460_s16 = smov 0  }
   0x8   :  { %s3462_s17 = smov 0   ;;  %s3464_s18 = smov 0  }
   0x9   :  { %s3466_s19 = smov 0   ;;  %s3468_s20 = smov 0  }
   0xa LB: > { %s2437_s21 = sadd.s32 4294967295, %s3416_s20   ;;  %s2438_s22 = sadd.s32 4294967294, %s3416_s20   ;;  %s3416_s20 = sphi %s3468_s20, %s22_s20   ;;  %s3412_s19 = sphi %s3466_s19, %s4215_s19   ;;  %s3408_s18 = sphi %s3464_s18, %s4214_s18   ;;  %s3404_s17 = sphi %s3462_s17, %s4213_s17   ;;  %s3400_s16 = sphi %s3460_s16, %s4212_s16   ;;  %s3396_s15 = sphi %s3458_s15, %s4211_s15  }
   0xb   : > { %p54_p0 = scmp.ne.s32.totalorder %s3400_s16, %s3396_s15  ;;  %p3492_p1 = scmp.eq.s32.totalorder %s2437_s21, 0 }
   0xc   : > { %p3496_p2 = scmp.eq.s32.totalorder %s2437_s21, 1  ;;  %p149_p3 = scmp.eq.s32.totalorder %s2438_s22, 1 }
   0xd   : > { %s4192_s23 = scalar_select %p3492_p1, 1, 0 }
   0xe   : > { %s4193_s24 = scalar_select %p3496_p2, 1, 0 }
   0xf   : > { %p3502_p4 = por %p3492_p1, %p54_p0  ;;  %p2439_p5 = scmp.ge.s32.totalorder %s3416_s20, 1 }
  0x10   : > { %p3507_p6 = por %p149_p3, %p54_p0  ;;  %p156_p7 = scmp.lt.s32.totalorder %s3416_s20, 3 }
  0x11   : > { %s4194_s25 = scalar_select %p3502_p4, 1, 0 }
  0x12   : > { %s4195_s26 = scalar_select %p3507_p6, 1, 0 }
  0x13   : > { %p3512_p8 = pnand %p2439_p5, %p156_p7  ;;  %s3418_s28 = smov [#allocation8]  }
  0x14   : > { %s168_s29 = sshll.u32 %s3418_s28, 4  ;;  %s3419_s5 = smov [#allocation10]   ;;  %s3516_s29 = int_to_ptr.vmem [resolvable:$true] %s168_s29 }
  0x15   : > { %s4196_s27 = scalar_select %p3512_p8, 1, 0 }
  0x16   : > { %p2960_p9 = pneg %p3512_p8  ;;  %s181_s6 = sshll.u32 %s3419_s5, 4  ;;  %s3527_s6 = int_to_ptr.vmem [resolvable:$true] %s181_s6 }
  0x17   : > { %s4198_s1 = sld [smem:[#allocation18_spill]] }
  0x18   : > { %p3523_p11 = pnand %p2960_p9, %p3492_p1 }
  0x1a   : > { %p3537_p13 = pneg %p3523_p11 }
  0x1d   : > { %s3212_s9 = scalar_lea.hbm %s4198_s1, 1024 }
  0x1e   : > { %p3213_p12 = scmp.ne.s32.totalorder %s4198_s1, %s3212_s9  ;;  %p3219_p5 = scmp.lt.u32.totalorder %s3212_s9, %s4198_s1 }
  0x20   : > { %p3215_p0 = pnand %p3537_p13, %p3213_p12 }
  0x22   : > { %p3216_p3 = pneg %p3215_p0 }
  0x24   : > { %p3221_p7 = pnand %p3219_p5, %p3216_p3 }
  0x26   : > { %3224 = shalt.err (!%p3221_p7)
}
  0x27   : > { %s3225_s21 = scalar_lea.vmem %s3516_s29, 1024  ;;  %p3233_p1 = scmp.lt.s32.totalorder %s3516_s29, %s3516_s29 }
  0x28   : > { %p3226_p9 = scmp.ne.s32.totalorder %s3516_s29, %s3225_s21  ;;  %p3234_p4 = scmp.lt.s32.totalorder %s3225_s21, %s3225_s21 }
  0x2a   : > { %p3228_p10 = pnand %p3226_p9, %p3537_p13  ;;  %p3235_p12 = por %p3234_p4, %p3233_p1 }
  0x2c   : > { %p3229_p6 = pneg %p3228_p10 }
  0x2e   : > { %p3236_p0 = pnand %p3235_p12, %p3229_p6 }
  0x30   : > { %3239 = shalt.err (!%p3236_p0)
}
  0x31   : > { %s4188_s22 = smov 64   ;;  %s4189_s28 = smov 4  }
  0x32   : > { %2963 = dma.hbm_to_vmem [thread:$0]  (!%p3523_p11), %s4198_s1, 1024, %s3516_s29, [#allocation9], %s4188_s22, %s4188_s22, %s4189_s28  }
  0x33   : > { %s3240_s10 = scalar_lea.hbm %s4182_s2, 2048 }
  0x34   : > { %p3241_p1 = scmp.ne.s32.totalorder %s4182_s2, %s3240_s10  ;;  %p3247_p10 = scmp.lt.u32.totalorder %s3240_s10, %s4182_s2 }
  0x36   : > { %p3243_p4 = pnand %p3241_p1, %p3537_p13 }
  0x38   : > { %p3244_p6 = pneg %p3243_p4 }
  0x3a   : > { %p3249_p3 = pnand %p3247_p10, %p3244_p6 }
  0x3c   : > { %3252 = shalt.err (!%p3249_p3)
}
  0x3d   : > { %s3253_s29 = scalar_lea.vmem %s3527_s6, 2048  ;;  %p3261_p12 = scmp.lt.s32.totalorder %s3527_s6, %s3527_s6 }
  0x3e   : > { %p3254_p5 = scmp.ne.s32.totalorder %s3527_s6, %s3253_s29  ;;  %p3262_p0 = scmp.lt.s32.totalorder %s3253_s29, %s3253_s29 }
  0x40   : > { %p3256_p7 = pnand %p3254_p5, %p3537_p13  ;;  %p3263_p1 = por %p3262_p0, %p3261_p12 }
  0x42   : > { %p3257_p9 = pneg %p3256_p7 }
  0x44   : > { %p3264_p4 = pnand %p3263_p1, %p3257_p9 }
  0x46   : > { %3267 = shalt.err (!%p3264_p4)
}
  0x47   : > { %s3422_s5 = smov 128   ;;  %s3423_s7 = smov 8  }
  0x48   : > { %2966 = dma.hbm_to_vmem [thread:$0]  (!%p3523_p11), %s4182_s2, 2048, %s3527_s6, [#allocation9], %s3422_s5, %s3422_s5, %s3423_s7  }
  0x49   : > { %s3424_s10 = smov [#allocation11]   ;;  %s3268_s21 = scalar_lea.hbm %s4183_s3, 2048 }
  0x4a   : > { %s194_s11 = sshll.u32 %s3424_s10, 4  ;;  %p3269_p6 = scmp.ne.s32.totalorder %s4183_s3, %s3268_s21  ;;  %s195_s11 = int_to_ptr.vmem [resolvable:$true] %s194_s11 }
  0x4b   : > { %p3275_p5 = scmp.lt.u32.totalorder %s3268_s21, %s4183_s3 }
  0x4c   : > { %p3271_p10 = pnand %p3269_p6, %p3537_p13 }
  0x4e   : > { %p3272_p3 = pneg %p3271_p10 }
  0x50   : > { %p3277_p7 = pnand %p3275_p5, %p3272_p3 }
  0x52   : > { %3280 = shalt.err (!%p3277_p7)
}
  0x53   : > { %s3281_s6 = scalar_lea.vmem %s195_s11, 2048  ;;  %p3289_p1 = scmp.lt.s32.totalorder %s195_s11, %s195_s11 }
  0x54   : > { %p3282_p9 = scmp.ne.s32.totalorder %s195_s11, %s3281_s6  ;;  %p3290_p4 = scmp.lt.s32.totalorder %s3281_s6, %s3281_s6 }
  0x56   : > { %p3284_p12 = pnand %p3282_p9, %p3537_p13  ;;  %p3291_p8 = por %p3290_p4, %p3289_p1 }
  0x58   : > { %p3285_p0 = pneg %p3284_p12 }
  0x5a   : > { %p3292_p2 = pnand %p3291_p8, %p3285_p0 }
  0x5c   : > { %3295 = shalt.err (!%p3292_p2)
}
  0x5d   : > { %2969 = dma.hbm_to_vmem [thread:$0]  (!%p3523_p11), %s4183_s3, 2048, %s195_s11, [#allocation12], %s3422_s5, %s3422_s5, %s3423_s7  }
  0x5e   : > { %s34_s1 = sadd.s32 1, %s3412_s19  ;;  %s41_s12 = sadd.s32 1, %s3404_s17 }
  0x5f   : > { %p36_p8 = scmp.ge.s32.totalorder %s34_s1, 2  ;;  %p48_p2 = scmp.ne.s32.totalorder %s3404_s17, %s3400_s16 }
  0x60   : > { %p49_p13 = scmp.eq.s32.totalorder %s3416_s20, 0  ;;  %p4201_p10 = scmp.ne.s32.totalorder %s4193_s24, 0 }
  0x61   : > { %s4217_s1 = smov (%p36_p8, %s34_s1), 0  ;;  %p2981_p11 = scmp.lt.s32.totalorder %s3416_s20, 2 }
  0x62   : > { %p3609_p6 = por %p49_p13, %p48_p2  ;;  %p3615_p3 = por %p4201_p10, %p48_p2 }
  0x63   : > { %s38_s9 = ssub.s32 %s3412_s19, %s4217_s1  ;;  %s208_s5 = sand.u32 1, %s3404_s17  }
  0x64   : > { %p39_p5 = scmp.eq.s32.totalorder %s38_s9, 0  ;;  %s2444_s7 = sshll.u32 %s208_s5, 5 }
  0x65   : > { %s2550_s11 = sshll.u32 %s3412_s19, 9  ;;  %s212_s24 = scalar_lea.vmem [#allocation5], %s2444_s7 }
  0x66   : > { %s3624_s10 = scalar_select %p39_p5, %s3404_s17, %s41_s12  }
  0x67   : > { %s3630_s21 = scalar_lea.hbm %s4180_s0, %s2550_s11  ;;  %s219_s29 = sshll.u32 %s212_s24, 4  ;;  %s3632_s29 = int_to_ptr.vmem [resolvable:$true] %s219_s29 }
  0x68   : > { %p3636_p7 = pnand %p2981_p11, %p3609_p6  ;;  %s3640_s22 = scalar_lea.sflag [#allocation6], %s208_s5 }
  0x69   : > { %s3296_s8 = scalar_lea.hbm %s3630_s21, 512  ;;  %s3301_s30 = scalar_lea.hbm %s4180_s0, 1024 }
  0x6a   : > { %p3297_p9 = scmp.ne.s32.totalorder %s3630_s21, %s3296_s8  ;;  %p3298_p12 = pneg %p3636_p7 }
  0x6b   : > { %p3302_p4 = scmp.lt.u32.totalorder %s3630_s21, %s4180_s0  ;;  %p3303_p8 = scmp.lt.u32.totalorder %s3301_s30, %s3296_s8 }
  0x6c   : > { %p3299_p0 = pnand %p3298_p12, %p3297_p9  ;;  %p3305_p13 = scmp.lt.u32.totalorder %s3296_s8, %s3630_s21 }
  0x6d   : > { %p3304_p2 = por %p3303_p8, %p3302_p4 }
  0x6e   : > { %p3300_p1 = pneg %p3299_p0 }
  0x6f   : > { %p3306_p6 = por %p3305_p13, %p3304_p2 }
  0x71   : > { %p3307_p10 = pnand %p3306_p6, %p3300_p1 }
  0x73   : > { %3310 = shalt.err (!%p3307_p10)
}
  0x74   : > { %s3311_s5 = scalar_lea.vmem %s3632_s29, 512  ;;  %s3425_s13 = smov [#allocation5]  }
  0x75   : > { %p3312_p11 = scmp.ne.s32.totalorder %s3632_s29, %s3311_s5  ;;  %s3316_s14 = sshll.u32 %s3425_s13, 4  ;;  %s3317_s14 = int_to_ptr.vmem [resolvable:$false] %s3316_s14 }
  0x76   : > { %s3318_s24 = scalar_lea.vmem %s3317_s14, 1024  ;;  %p3319_p0 = scmp.lt.s32.totalorder %s3632_s29, %s3317_s14 }
  0x77   : > { %p3314_p5 = pnand %p3312_p11, %p3298_p12  ;;  %p3320_p4 = scmp.lt.s32.totalorder %s3318_s24, %s3311_s5 }
  0x79   : > { %p3315_p9 = pneg %p3314_p5  ;;  %p3321_p8 = por %p3320_p4, %p3319_p0 }
  0x7b   : > { %p3322_p2 = pnand %p3321_p8, %p3315_p9 }
  0x7d   : > { %3325 = shalt.err (!%p3322_p2)
}
  0x7e   : > { %s4204_s8 = smov 4   ;;  %s4205_s12 = smov 64  }
  0x7f   : > { %2973 = dma.hbm_to_vmem [thread:$0]  (!%p3636_p7), %s3630_s21, 512, %s3632_s29, %s3640_s22, %s4205_s12, %s4205_s12, %s4204_s8  }
  0x80   : > { %p4206_p12 = scmp.ne.s32.totalorder %s4196_s27, 0 }
  0x81   : > { %s3674_s9 = sand.u32 (!%p4206_p12), 1, %s3400_s16   ;;  %p4207_p1 = scmp.ne.s32.totalorder (!%p4206_p12), %s4194_s25, 0 }
  0x82   : > { %231 = sbr.rel (%p4206_p12) target bundleno = 2480 (0x9b0), region = 36  ;;  %s2448_s30 = sshll.u32 (!%p4206_p12), %s3674_s9, 5 }
  0x83   : > { %s234_s7 = scalar_lea.sflag (!%p4206_p12), [#allocation6], %s3674_s9  ;;  %s3678_s11 = scalar_lea.vmem (!%p4206_p12), [#allocation5], %s2448_s30 }
  0x89   : > { %3379 = dma.done.wait (%p4207_p1), %s234_s7, 512  }
  0x8a   : > { %3381 = vsyncadd (%p4207_p1), %s234_s7, 4294966784  ;;  %p4208_p7 = scmp.ne.s32.totalorder %s4192_s23, 0 }
  0x8c   : > { %3383 = dma.done.wait (%p4208_p7), [#allocation9], 3072  }
  0x8d   : > { %3385 = vsyncadd (%p4208_p7), [#allocation9], 4294964224 }
  0x8e   : > { %3387 = dma.done.wait (%p4208_p7), [#allocation12], 2048  }
  0x8f   : > { %3389 = vsyncadd (%p4208_p7), [#allocation12], 4294965248  ;;  %v3426_v0 = vmov 0   ;;  %v3048_v1 = vld [vmem:[#allocation10 + $0x4] ss:$8 sps:$4 sm:$0xff]   ;;  %v3078_v16 = vld [vmem:[#allocation8 + $0x10] sm:$0xff]  }
  0x90   : > { %577 = vmatprep.mubr.bf16.mxu1 %v3426_v0  ;;  %v3050_v2 = vld [vmem:[#allocation10] ss:$8 sps:$4 sm:$0xff]   ;;  %545 = vmatprep.subr.bf16.mxu1 %v3048_v1  ;;  %v3051_v3 = vld [vmem:[#allocation10 + $0x14] ss:$8 sps:$4 sm:$0xff]   ;;  %v3053_v4 = vld [vmem:[#allocation10 + $0x10] ss:$8 sps:$4 sm:$0xff]  }
  0x91   : > { %546 = vmatpush1.bf16.msra.mxu1 %v3050_v2  ;;  %v3054_v5 = vld [vmem:[#allocation10 + $0x24] ss:$8 sps:$4 sm:$0xff]   ;;  %v3056_v6 = vld [vmem:[#allocation10 + $0x20] ss:$8 sps:$4 sm:$0xff]   ;;  %v3057_v7 = vld [vmem:[#allocation10 + $0x34] ss:$8 sps:$4 sm:$0xff]  }
  0x92   : > { %547 = vmatprep.subr.bf16.mxu1 %v3051_v3  ;;  %v3059_v8 = vld [vmem:[#allocation10 + $0x30] ss:$8 sps:$4 sm:$0xff]   ;;  %v3072_v9 = vld [vmem:[%s3678_s11] sm:$0xff]   ;;  %v3063_v12 = vld [vmem:[#allocation10 + $0x54] ss:$8 sps:$4 sm:$0xff]   ;;  %vm690_vm0 = vcmask 261120  }
  0x93   : > { %v3060_v10 = vld [vmem:[#allocation10 + $0x44] ss:$8 sps:$4 sm:$0xff]   ;;  %v3062_v11 = vld [vmem:[#allocation10 + $0x40] ss:$8 sps:$4 sm:$0xff]   ;;  %2684 = vmatprep.mubr.bf16.mxu0 %v3072_v9  ;;  %v3065_v15 = vld [vmem:[#allocation10 + $0x50] ss:$8 sps:$4 sm:$0xff]  }
  0x94   : > { %v3076_v13 = vld [vmem:[#allocation8] sm:$0xff]   ;;  %v3077_v14 = vld [vmem:[#allocation8 + $0x8] sm:$0xff]   ;;  %v3079_v19 = vld [vmem:[#allocation8 + $0x18] sm:$0xff]   ;;  %s3427_s23 = smov 96   ;;  %vm658_vm1 = vcmask 523264   ;;  %s3428_s25 = smov 64  }
  0x95   : > { %548 = vmatpush1.bf16.msra.mxu1 %v3053_v4  ;;  %2668 = vmatprep.subr.bf16.mxu0 %v3076_v13  ;;  %v3066_v17 = vld [vmem:[#allocation10 + $0x64] ss:$8 sps:$4 sm:$0xff]   ;;  %v3068_v18 = vld [vmem:[#allocation10 + $0x60] ss:$8 sps:$4 sm:$0xff]   ;;  %v3069_v20 = vld [vmem:[#allocation10 + $0x74] ss:$8 sps:$4 sm:$0xff]  }
  0x96   : > { %549 = vmatprep.subr.bf16.mxu1 %v3054_v5  ;;  %2669 = vmatpush3.bf16.msra.mxu0 %v3076_v13  ;;  %v3071_v21 = vld [vmem:[#allocation10 + $0x70] ss:$8 sps:$4 sm:$0xff]   ;;  %v3080_v22 = vld [vmem:[#allocation8 + $0x20] sm:$0xff]   ;;  %v3081_v23 = vld [vmem:[#allocation8 + $0x28] sm:$0xff]   ;;  %s3429_s27 = smov 32   ;;  %s2452_s21 = sshll.u32 %s3674_s9, 6 }
  0x97   : > { %2670 = vmatprep.subr.bf16.mxu0 %v3077_v14  ;;  %v3082_v24 = vld [vmem:[#allocation8 + $0x30] sm:$0xff]   ;;  %v3073_v25 = vld [vmem:[%s3678_s11 + $0x8] sm:$0xff]   ;;  %v3083_v26 = vld [vmem:[#allocation8 + $0x38] sm:$0xff]   ;;  %s273_s29 = scalar_lea.vmem [#allocation13], %s2452_s21  ;;  %s2551_s22 = sshll.u32 %s3408_s18, 10 }
  0x98   : > { %v3074_v27 = vld [vmem:[%s3678_s11 + $0x10] sm:$0xff]   ;;  %v3075_v28 = vld [vmem:[%s3678_s11 + $0x18] sm:$0xff]   ;;  %s2322_s6 = sshll.u32 %s273_s29, 4  ;;  %s4131_s14 = scalar_lea.hbm %s4184_s4, %s2551_s22  ;;  %s4126_s6 = int_to_ptr.vmem [resolvable:$true] %s2322_s6 }
  0x99   : > { %550 = vmatpush1.bf16.msra.mxu1 %v3056_v6  ;;  %s2307_s24 = scalar_lea.sflag [#allocation7], %s3674_s9  ;;  %s3326_s8 = scalar_lea.vmem %s4126_s6, 1024 }
  0x9a   : > { %551 = vmatprep.subr.bf16.mxu1 %v3057_v7  ;;  %2671 = vmatpush3.bf16.msra.mxu0 %v3077_v14  ;;  %p3327_p13 = scmp.ne.s32.totalorder %s4126_s6, %s3326_s8  ;;  %s3430_s18 = smov [#allocation13]  }
  0x9b   : > { %2672 = vmatprep.subr.bf16.mxu0 %v3078_v16  ;;  %s3330_s12 = sshll.u32 %s3430_s18, 4  ;;  %s3331_s12 = int_to_ptr.vmem [resolvable:$false] %s3330_s12 }
  0x9c   : > { %p3328_p6 = pnand %p3327_p13, %p3615_p3  ;;  %s3332_s30 = scalar_lea.vmem %s3331_s12, 2048 }
  0x9d   : > { %552 = vmatpush1.bf16.msra.mxu1 %v3059_v8  ;;  %p3333_p11 = scmp.lt.s32.totalorder %s4126_s6, %s3331_s12  ;;  %p3334_p5 = scmp.lt.s32.totalorder %s3332_s30, %s3326_s8 }
  0x9e   : > { %553 = vmatprep.subr.bf16.mxu1 %v3060_v10  ;;  %2673 = vmatpush3.bf16.msra.mxu0 %v3078_v16  ;;  %p3329_p10 = pneg %p3328_p6 }
  0x9f   : > { %2674 = vmatprep.subr.bf16.mxu0 %v3079_v19  ;;  %p3335_p9 = por %p3334_p5, %p3333_p11 }
  0xa1   : > { %554 = vmatpush1.bf16.msra.mxu1 %v3062_v11  ;;  %p3336_p0 = pnand %p3335_p9, %p3329_p10 }
  0xa2   : > { %555 = vmatprep.subr.bf16.mxu1 %v3063_v12  ;;  %2675 = vmatpush3.bf16.msra.mxu0 %v3079_v19 }
  0xa3   : > { %2676 = vmatprep.subr.bf16.mxu0 %v3080_v22 }
  0xa5   : > { %556 = vmatpush1.bf16.msra.mxu1 %v3065_v15 }
  0xa6   : > { %557 = vmatprep.subr.bf16.mxu1 %v3066_v17  ;;  %2677 = vmatpush3.bf16.msra.mxu0 %v3080_v22 }
  0xa7   : > { %2678 = vmatprep.subr.bf16.mxu0 %v3081_v23 }
  0xa9   : > { %558 = vmatpush1.bf16.msra.mxu1 %v3068_v18 }
  0xaa   : > { %559 = vmatprep.subr.bf16.mxu1 %v3069_v20  ;;  %2679 = vmatpush3.bf16.msra.mxu0 %v3081_v23 }
  0xab   : > { %2680 = vmatprep.subr.bf16.mxu0 %v3082_v24 }
  0xad   : > { %560 = vmatpush1.bf16.msra.mxu1 %v3071_v21 }
  0xae   : > { %2681 = vmatpush3.bf16.msra.mxu0 %v3082_v24 }
  0xaf   : > { %2682 = vmatprep.subr.bf16.mxu0 %v3083_v26 }
  0xb0   : > { %578 = vmatmul.mubr.bf16.vlgmr.msra.gmra.mrb[0].mxu1 %v3072_v9 }
  0xb1   : > { %587 = vmatprep.mubr.bf16.mxu1 %v3426_v0 }
  0xb2   : > { %2683 = vmatpush3.bf16.msra.mxu0 %v3083_v26 }
  0xb5   : > { %2685 = vmatmul.mubr.bf16.vlgmr.msra.gmra.mrb[0].mxu0 %v3073_v25 }
  0xb6   : > { %2688 = vmatprep.mubr.bf16.mxu0 %v3074_v27 }
  0xb8   : > { %588 = vmatmul.mubr.bf16.gmra.mrb[4].mxu1 %v3073_v25 }
  0xb9   : > { %597 = vmatprep.mubr.bf16.mxu1 %v3426_v0 }
  0xbd   : > { %2689 = vmatmul.mubr.bf16.gmra.mrb[4].mxu0 %v3075_v28 }
  0xc0   : > { %598 = vmatmul.mubr.bf16.gmra.mrb[8].mxu1 %v3074_v27 }
  0xc1   : > { %607 = vmatprep.mubr.bf16.mxu1 %v3426_v0 }
  0xc8   : > { %608 = vmatmul.mubr.bf16.gmra.mrb[12].mxu1 %v3075_v28 }
 0x183   : > { %v579_v29 = vpop.f32.mrb[0].mxu1 }
 0x184   : > { %618 = vxpose.xlu0.b32.start [1/8] (short) %v579_v29, 128  ;;  %v581_v30 = vpop.f32.mrb[1].mxu1 }
 0x185   : > { %v583_v31 = vpop.f32.mrb[2].mxu1 }
 0x186   : > { %v585_v32 = vpop.f32.mrb[3].mxu1 }
 0x187   : > { %v3700_v33 = vpack.c.bf16 %v585_v32, %v581_v30 }
 0x188   : > { %619 = vxpose.xlu0.b32.cont [2/8] (short) %v583_v31, 128  ;;  %v2686_v39 = vpop.f32.mrb[0].mxu0 }
 0x189   : > { %v410_v41 = vpop.f32.mrb[1].mxu0 }
 0x18a   : > { %v2687_v43 = vpop.f32.mrb[2].mxu0 }
 0x18b   : > { %v589_v34 = vpop.f32.mrb[4].mxu1  ;;  %v3704_v45 = vpack.c.bf16 %v2687_v43, %v2686_v39  ;;  %v413_v46 = vpop.f32.mrb[3].mxu0 }
 0x18c   : > { %620 = vxpose.xlu0.b32.cont [3/8] (short) %v589_v34, 128  ;;  %v591_v35 = vpop.f32.mrb[5].mxu1  ;;  %v3706_v48 = vpack.c.bf16 %v413_v46, %v410_v41 }
 0x18d   : > { %v593_v36 = vpop.f32.mrb[6].mxu1 }
 0x18e   : > { %v595_v37 = vpop.f32.mrb[7].mxu1  ;;  %948 = vrot.lane.b32.xlu1 %v3706_v48, %s3427_s23  ;;  %2696 = vmatprep.mubr.msk.bf16.mxu0 %vm690_vm0, %v3706_v48 }
 0x18f   : > { %v3702_v38 = vpack.c.bf16 %v595_v37, %v591_v35 }
 0x190   : > { %621 = vxpose.xlu0.b32.cont [4/8] (short) %v593_v36, 128  ;;  %v2690_v50 = vpop.f32.mrb[4].mxu0 }
 0x191   : > { %v426_v52 = vpop.f32.mrb[5].mxu0 }
 0x192   : > { %950 = vrot.lane.b32.xlu1 %v3704_v45, %s3427_s23  ;;  %v2691_v54 = vpop.f32.mrb[6].mxu0 }
 0x193   : > { %v599_v40 = vpop.f32.mrb[8].mxu1  ;;  %v3716_v56 = vpack.c.bf16 %v2691_v54, %v2690_v50  ;;  %v429_v57 = vpop.f32.mrb[7].mxu0 }
 0x194   : > { %622 = vxpose.xlu0.b32.cont [5/8] (short) %v599_v40, 128  ;;  %v601_v42 = vpop.f32.mrb[9].mxu1  ;;  %v3718_v59 = vpack.c.bf16 %v429_v57, %v426_v52 }
 0x195   : > { %v603_v44 = vpop.f32.mrb[10].mxu1 }
 0x196   : > { %v605_v47 = vpop.f32.mrb[11].mxu1  ;;  %952 = vrot.lane.b32.xlu1 %v3718_v59, %s3427_s23 }
 0x197   : > { %v3708_v49 = vpack.c.bf16 %v605_v47, %v601_v42 }
 0x198   : > { %623 = vxpose.xlu0.b32.cont [6/8] (short) %v603_v44, 128 }
 0x19a   : > { %954 = vrot.lane.b32.xlu1 %v3716_v56, %s3427_s23 }
 0x19b   : > { %v609_v51 = vpop.f32.mrb[12].mxu1 }
 0x19c   : > { %624 = vxpose.xlu0.b32.cont [7/8] (short) %v609_v51, 128  ;;  %v611_v53 = vpop.f32.mrb[13].mxu1 }
 0x19d   : > { %v613_v55 = vpop.f32.mrb[14].mxu1 }
 0x19e   : > { %v615_v58 = vpop.f32.mrb[15].mxu1 }
 0x19f   : > { %v3720_v60 = vpack.c.bf16 %v615_v58, %v611_v53 }
 0x1a0   : > { %625 = vxpose.xlu0.b32.end [8/8] (short) %v613_v55, 128 }
 0x200   : > { %v949_v0 = vpop.permute.xlu1 %948 }
 0x201   : > { %2724 = vmatprep.mubr.msk.bf16.mxu1 %vm690_vm0, %v949_v0 }
 0x204   : > { %v634_v61 = vpop.trf.xlu0  ;;  %v951_v13 = vpop.permute.xlu1 %950 }
 0x208   : > { %v635_v62 = vpop.trf.xlu0  ;;  %v953_v15 = vpop.permute.xlu1 %952 }
 0x209   : > { %v650_v63 = vpack.c.bf16 %v635_v62, %v634_v61 }
 0x20b   : > { %659 = vst.msk [vmem:[#allocation3] sm:$0xff] %vm658_vm1, %v650_v63 }
 0x20c   : > { %v636_v1 = vpop.trf.xlu0  ;;  %v955_v16 = vpop.permute.xlu1 %954 }
 0x210   : > { %v637_v2 = vpop.trf.xlu0 }
 0x211   : > { %v651_v3 = vpack.c.bf16 %v637_v2, %v636_v1  ;;  %v1218_v2 = vld [vmem:[#allocation11 + $0x20] sm:$0xff] }
 0x212   : > { %v684_v4 = vld [vmem:[#allocation3] sm:$0xff] }
 0x213   : > { %660 = vst.msk [vmem:[#allocation3 + $0x8] sm:$0xff] %vm658_vm1, %v651_v3  ;;  %2692 = vmatprep.subr.bf16.mxu0 %v684_v4  ;;  %v1219_v3 = vld [vmem:[#allocation11 + $0x28] sm:$0xff] }
 0x214   : > { %2693 = vmatpush3.bf16.msra.mxu0 %v684_v4  ;;  %v638_v5 = vpop.trf.xlu0  ;;  %v3818_v4 = vpack.c.bf16 %v1219_v3, %v1218_v2 }
 0x218   : > { %v639_v6 = vpop.trf.xlu0 }
 0x219   : > { %v652_v7 = vpack.c.bf16 %v639_v6, %v638_v5  ;;  %v1220_v5 = vld [vmem:[#allocation11 + $0x30] sm:$0xff]  ;;  %v1221_v6 = vld [vmem:[#allocation11 + $0x38] sm:$0xff] }
 0x21a   : > { %v685_v8 = vld [vmem:[#allocation3 + $0x8] sm:$0xff] }
 0x21b   : > { %2694 = vmatprep.subr.bf16.mxu0 %v685_v8  ;;  %661 = vst.msk [vmem:[#allocation3 + $0x10] sm:$0xff] %vm658_vm1, %v652_v7  ;;  %v3822_v7 = vpack.c.bf16 %v1221_v6, %v1220_v5 }
 0x21c   : > { %2695 = vmatpush3.bf16.msra.mxu0 %v685_v8  ;;  %v640_v9 = vpop.trf.xlu0 }
 0x21d   : > { %2704 = vmatprep.subr.bf16.mxu0 %v3700_v33 }
 0x21f   : > { %2697 = vmatmul.mubr.msk.bf16.vlgmr.msra.gmra.mrb[8].mxu0 %vm690_vm0, %v3704_v45 }
 0x220   : > { %2705 = vmatpush3.bf16.msra.mxu0 %v3700_v33  ;;  %v641_v10 = vpop.trf.xlu0  ;;  %2700 = vmatprep.mubr.msk.bf16.mxu0 %vm690_vm0, %v3718_v59 }
 0x221   : > { %2706 = vmatprep.subr.bf16.mxu0 %v3702_v38  ;;  %v653_v11 = vpack.c.bf16 %v641_v10, %v640_v9 }
 0x222   : > { %v942_v12 = vld [vmem:[#allocation3 + $0x10] sm:$0xff] }
 0x223   : > { %662 = vst.msk [vmem:[#allocation3 + $0x18] sm:$0xff] %vm658_vm1, %v653_v11  ;;  %2720 = vmatprep.subr.bf16.mxu1 %v942_v12 }
 0x224   : > { %2707 = vmatpush3.bf16.msra.mxu0 %v3702_v38  ;;  %2721 = vmatpush3.bf16.msra.mxu1 %v942_v12  ;;  %v642_v17 = vpop.trf.xlu0 }
 0x225   : > { %2708 = vmatprep.subr.bf16.mxu0 %v3708_v49 }
 0x227   : > { %2701 = vmatmul.mubr.msk.bf16.gmra.mrb[12].mxu0 %vm690_vm0, %v3716_v56 }
 0x228   : > { %2709 = vmatpush3.bf16.msra.mxu0 %v3708_v49  ;;  %v643_v18 = vpop.trf.xlu0 }
 0x229   : > { %2710 = vmatprep.subr.bf16.mxu0 %v3720_v60  ;;  %v654_v19 = vpack.c.bf16 %v643_v18, %v642_v17 }
 0x22a   : > { %v943_v14 = vld [vmem:[#allocation3 + $0x18] sm:$0xff] }
 0x22b   : > { %2722 = vmatprep.subr.bf16.mxu1 %v943_v14  ;;  %663 = vst.msk [vmem:[#allocation3 + $0x20] sm:$0xff] %vm658_vm1, %v654_v19 }
 0x22c   : > { %2711 = vmatpush3.bf16.msra.mxu0 %v3720_v60  ;;  %2723 = vmatpush3.bf16.msra.mxu1 %v943_v14  ;;  %v644_v20 = vpop.trf.xlu0 }
 0x22d   : > { %2916 = vmatprep.subr.bf16.mxu1 %v3818_v4 }
 0x22f   : > { %2725 = vmatmul.mubr.msk.bf16.vlgmr.msra.gmra.mrb[16].mxu1 %vm690_vm0, %v951_v13 }
 0x230   : > { %2728 = vmatprep.mubr.msk.bf16.mxu1 %vm690_vm0, %v953_v15  ;;  %v645_v21 = vpop.trf.xlu0  ;;  %2918 = vmatpush3.bf16.msra.mxu1 %v3818_v4 }
 0x231   : > { %v655_v22 = vpack.c.bf16 %v645_v21, %v644_v20  ;;  %2917 = vmatprep.subr.bf16.mxu1 %v3822_v7 }
 0x233   : > { %664 = vst.msk [vmem:[#allocation3 + $0x28] sm:$0xff] %vm658_vm1, %v655_v22 }
 0x234   : > { %v646_v25 = vpop.trf.xlu0  ;;  %2919 = vmatpush3.bf16.msra.mxu1 %v3822_v7 }
 0x237   : > { %2729 = vmatmul.mubr.msk.bf16.gmra.mrb[20].mxu1 %vm690_vm0, %v955_v16 }
 0x238   : > { %v647_v30 = vpop.trf.xlu0 }
 0x239   : > { %v656_v32 = vpack.c.bf16 %v647_v30, %v646_v25 }
 0x23b   : > { %665 = vst.msk [vmem:[#allocation3 + $0x30] sm:$0xff] %vm658_vm1, %v656_v32 }
 0x23c   : > { %v648_v36 = vpop.trf.xlu0 }
 0x240   : > { %v649_v41 = vpop.trf.xlu0 }
 0x241   : > { %v657_v42 = vpack.c.bf16 %v649_v41, %v648_v36 }
 0x243   : > { %666 = vst.msk [vmem:[#allocation3 + $0x38] sm:$0xff] %vm658_vm1, %v657_v42 }
 0x2f2   : > { %v3749_v23 = vpop.f32.mrb[8].mxu0 }
 0x2f3   : > { %v3752_v24 = vpop.f32.mrb[9].mxu0  ;;  %v775_v31 = vsel %vm658_vm1, %v3749_v23, -inf }
 0x2f4   : > { %v3754_v26 = vpop.f32.mrb[10].mxu0  ;;  %v769_v27 = vsel %vm658_vm1, %v3752_v24, -inf }
 0x2f5   : > { %v3758_v28 = vpop.f32.mrb[11].mxu0  ;;  %770 = vmax.xlane.f32.xlu1 %v769_v27  ;;  %v778_v37 = vsel %vm658_vm1, %v3754_v26, -inf }
 0x2f6   : > { %v772_v29 = vsel %vm658_vm1, %v3758_v28, -inf }
 0x2f7   : > { %773 = vmax.xlane.f32.xlu0 %v772_v29 }
 0x2f9   : > { %776 = vmax.xlane.f32.xlu1 %v775_v31 }
 0x2fa   : > { %v3764_v34 = vpop.f32.mrb[12].mxu0 }
 0x2fb   : > { %v3767_v35 = vpop.f32.mrb[13].mxu0  ;;  %v787_v55 = vsel %vm658_vm1, %v3764_v34, -inf }
 0x2fc   : > { %v3771_v39 = vpop.f32.mrb[14].mxu0  ;;  %v781_v57 = vsel %vm658_vm1, %v3767_v35, -inf }
 0x2fd   : > { %779 = vmax.xlane.f32.xlu1 %v778_v37  ;;  %v3773_v40 = vpop.f32.mrb[15].mxu0  ;;  %v790_v58 = vsel %vm658_vm1, %v3771_v39, -inf }
 0x2fe   : > { %v784_v61 = vsel %vm658_vm1, %v3773_v40, -inf }
 0x302   : > { %v3775_v43 = vpop.f32.mrb[16].mxu1 }
 0x303   : > { %v3778_v44 = vpop.f32.mrb[17].mxu1  ;;  %v1039_v62 = vsel %vm658_vm1, %v3775_v43, -inf }
 0x304   : > { %v3780_v46 = vpop.f32.mrb[18].mxu1  ;;  %v1033_v63 = vsel %vm658_vm1, %v3778_v44, -inf }
 0x305   : > { %v3782_v47 = vpop.f32.mrb[19].mxu1  ;;  %v1042_v0 = vsel %vm658_vm1, %v3780_v46, -inf }
 0x306   : > { %v1036_v1 = vsel %vm658_vm1, %v3782_v47, -inf }
 0x30a   : > { %v3784_v50 = vpop.f32.mrb[20].mxu1 }
 0x30b   : > { %v3786_v51 = vpop.f32.mrb[21].mxu1  ;;  %v1051_v17 = vsel %vm658_vm1, %v3784_v50, -inf }
 0x30c   : > { %v3788_v52 = vpop.f32.mrb[22].mxu1  ;;  %v1045_v11 = vsel %vm658_vm1, %v3786_v51, -inf }
 0x30d   : > { %1115 = vrot.lane.b32.xlu0 %v3702_v38, %s3427_s23  ;;  %v3792_v53 = vpop.f32.mrb[23].mxu1  ;;  %v1054_v21 = vsel %vm658_vm1, %v3788_v52, -inf }
 0x30e   : > { %1113 = vrot.lane.b32.xlu1 %v3700_v33, %s3427_s23  ;;  %v1048_v54 = vsel %vm658_vm1, %v3792_v53, -inf }
 0x312   : > { %1117 = vrot.lane.b32.xlu1 %v3708_v49, %s3427_s23 }
 0x32c   : > { %1049 = vmax.xlane.f32.xlu0 %v1048_v54 }
 0x336   : > { %788 = vmax.xlane.f32.xlu1 %v787_v55 }
 0x33a   : > { %782 = vmax.xlane.f32.xlu1 %v781_v57 }
 0x33e   : > { %791 = vmax.xlane.f32.xlu1 %v790_v58 }
 0x342   : > { %785 = vmax.xlane.f32.xlu1 %v784_v61 }
 0x346   : > { %1040 = vmax.xlane.f32.xlu1 %v1039_v62 }
 0x34a   : > { %1034 = vmax.xlane.f32.xlu1 %v1033_v63 }
 0x34e   : > { %1043 = vmax.xlane.f32.xlu1 %v1042_v0 }
 0x352   : > { %1037 = vmax.xlane.f32.xlu1 %v1036_v1 }
 0x363   : > { %1119 = vrot.lane.b32.xlu1 %v3720_v60, %s3427_s23 }
 0x382   : > { %v771_v8 = vpop.xlane.xlu1 %770 }
 0x383   : > { %v793_v9 = vsub.f32 %v3752_v24, %v771_v8 }
 0x384   : > { %v774_v10 = vpop.xlane.xlu0 %773 }
 0x385   : > { %v801_v12 = vmul.f32 1.442695, %v793_v9  ;;  %v794_v13 = vsub.f32 %v3758_v28, %v774_v10 }
 0x386   : > { %v777_v14 = vpop.xlane.xlu1 %776 }
 0x387   : > { %v803_v15 = vmul.f32 1.442695, %v794_v13  ;;  %v795_v16 = vsub.f32 %v3749_v23, %v777_v14  ;;  %1046 = vmax.xlane.f32.xlu1 %v1045_v11  ;;  %3084 = vpow2.f32 %v801_v12 }
 0x388   : > { %v1116_v30 = vpop.permute.xlu0 %1115 }
 0x389   : > { %3086 = vpow2.f32 %v803_v15  ;;  %v805_v18 = vmul.f32 1.442695, %v795_v16 }
 0x38a   : > { %v780_v19 = vpop.xlane.xlu1 %779 }
 0x38b   : > { %v796_v20 = vsub.f32 %v3754_v26, %v780_v19  ;;  %1052 = vmax.xlane.f32.xlu1 %v1051_v17  ;;  %3088 = vpow2.f32 %v805_v18 }
 0x38d   : > { %v807_v22 = vmul.f32 1.442695, %v796_v20 }
 0x38e   : > { %v1114_v24 = vpop.permute.xlu1 %1113 }
 0x38f   : > { %3090 = vpow2.f32 %v807_v22  ;;  %2732 = vmatprep.subr.bf16.mxu0 %v1114_v24  ;;  %1055 = vmax.xlane.f32.xlu1 %v1054_v21 }
 0x391   : > { %v3836_v23 = vpop.eup %3084 }
 0x392   : > { %v1118_v31 = vpop.permute.xlu1 %1117 }
 0x393   : > { %v3838_v25 = vpop.eup %3086 }
 0x394   : > { %v841_v27 = vpack.c.bf16 %v3838_v25, %v3836_v23 }
 0x395   : > { %v3843_v26 = vpop.eup %3088 }
 0x396   : > { %2712 = vmatprep.mubr.msk.bf16.mxu0 %vm658_vm1, %v841_v27 }
 0x399   : > { %v3845_v28 = vpop.eup %3090 }
 0x39a   : > { %v842_v29 = vpack.c.bf16 %v3845_v28, %v3843_v26 }
 0x39c   : > { %2713 = vmatmul.mubr.msk.bf16.vlgmr.msra.gmra.mrb[16].mxu0 %vm658_vm1, %v842_v29 }
 0x39d   : > { %2733 = vmatpush3.bf16.msra.mxu0 %v1114_v24  ;;  %v3882_v24 = vld [vmem:[#allocation3 + $0x20] sm:$0xff] }
 0x39e   : > { %2734 = vmatprep.subr.bf16.mxu0 %v1116_v30 }
 0x3a1   : > { %2735 = vmatpush3.bf16.msra.mxu0 %v1116_v30 }
 0x3a2   : > { %2736 = vmatprep.subr.bf16.mxu0 %v1118_v31 }
 0x3a5   : > { %2737 = vmatpush3.bf16.msra.mxu0 %v1118_v31 }
 0x3c3   : > { %v789_v32 = vpop.xlane.xlu1 %788 }
 0x3c4   : > { %v799_v36 = vsub.f32 %v3764_v34, %v789_v32 }
 0x3c6   : > { %v813_v41 = vmul.f32 1.442695, %v799_v36 }
 0x3c7   : > { %v783_v37 = vpop.xlane.xlu1 %782 }
 0x3c8   : > { %v797_v42 = vsub.f32 %v3767_v35, %v783_v37  ;;  %3092 = vpow2.f32 %v813_v41 }
 0x3ca   : > { %v809_v58 = vmul.f32 1.442695, %v797_v42 }
 0x3cb   : > { %v792_v54 = vpop.xlane.xlu1 %791 }
 0x3cc   : > { %v800_v55 = vsub.f32 %v3771_v39, %v792_v54 }
 0x3ce   : > { %v815_v57 = vmul.f32 1.442695, %v800_v55 }
 0x3cf   : > { %v786_v61 = vpop.xlane.xlu1 %785 }
 0x3d0   : > { %3094 = vpow2.f32 %v815_v57  ;;  %v798_v62 = vsub.f32 %v3773_v40, %v786_v61 }
 0x3d1   : > { %3096 = vpow2.f32 %v809_v58 }
 0x3d2   : > { %v811_v63 = vmul.f32 1.442695, %v798_v62  ;;  %v3856_v3 = vpop.eup %3092 }
 0x3d3   : > { %v1041_v0 = vpop.xlane.xlu1 %1040 }
 0x3d4   : > { %3098 = vpow2.f32 %v811_v63  ;;  %v1059_v34 = vsub.f32 %v3775_v43, %v1041_v0 }
 0x3d6   : > { %v1069_v1 = vmul.f32 1.442695, %v1059_v34 }
 0x3d7   : > { %v1035_v2 = vpop.xlane.xlu1 %1034 }
 0x3d8   : > { %3100 = vpow2.f32 %v1069_v1  ;;  %v1057_v35 = vsub.f32 %v3778_v44, %v1035_v2 }
 0x3da   : > { %v3858_v39 = vpop.eup %3094  ;;  %v1065_v5 = vmul.f32 1.442695, %v1057_v35 }
 0x3db   : > { %v1044_v6 = vpop.xlane.xlu1 %1043  ;;  %v844_v40 = vpack.c.bf16 %v3858_v39, %v3856_v3  ;;  %v3863_v9 = vpop.eup %3096 }
 0x3dc   : > { %3102 = vpow2.f32 %v1065_v5  ;;  %v1060_v8 = vsub.f32 %v3780_v46, %v1044_v6 }
 0x3de   : > { %v3865_v43 = vpop.eup %3098  ;;  %v1071_v10 = vmul.f32 1.442695, %v1060_v8 }
 0x3df   : > { %v1038_v11 = vpop.xlane.xlu1 %1037  ;;  %v843_v44 = vpack.c.bf16 %v3865_v43, %v3863_v9 }
 0x3e0   : > { %3104 = vpow2.f32 %v1071_v10  ;;  %v1058_v12 = vsub.f32 %v3782_v47, %v1038_v11 }
 0x3e1   : > { %2716 = vmatprep.mubr.msk.bf16.mxu0 %vm658_vm1, %v843_v44 }
 0x3e2   : > { %v3101_v13 = vpop.eup %3100  ;;  %v1067_v14 = vmul.f32 1.442695, %v1058_v12  ;;  %2717 = vmatmul.mubr.msk.bf16.gmra.mrb[20].mxu0 %vm658_vm1, %v844_v40 }
 0x3e3   : > { %v1120_v15 = vpop.permute.xlu1 %1119  ;;  %v1087_v46 = vsel %vm658_vm1, %v3101_v13, 0.0 }
 0x3e4   : > { %3106 = vpow2.f32 %v1067_v14  ;;  %1088 = vadd.xlane.f32.xlu1 %v1087_v46  ;;  %2738 = vmatprep.subr.bf16.mxu0 %v1120_v15 }
 0x3e5   : > { %2739 = vmatpush3.bf16.msra.mxu0 %v1120_v15 }
 0x3e6   : > { %v3103_v16 = vpop.eup %3102  ;;  %2885 = vmatprep.subr.bf16.mxu0 %v3818_v4 }
 0x3e7   : > { %v1081_v17 = vsel %vm658_vm1, %v3103_v16, 0.0 }
 0x3e8   : > { %1082 = vadd.xlane.f32.xlu1 %v1081_v17 }
 0x3ea   : > { %v3105_v47 = vpop.eup %3104 }
 0x3eb   : > { %v1106_v18 = vpack.c.bf16 %v3105_v47, %v3101_v13  ;;  %v1090_v22 = vsel %vm658_vm1, %v3105_v47, 0.0 }
 0x3ee   : > { %v3107_v19 = vpop.eup %3106 }
 0x3ef   : > { %v1084_v20 = vsel %vm658_vm1, %v3107_v19, 0.0  ;;  %v1105_v21 = vpack.c.bf16 %v3107_v19, %v3103_v16 }
 0x3f0   : > { %1085 = vadd.xlane.f32.xlu0 %v1084_v20  ;;  %v1481_v20 = vld [vmem:[#allocation3 + $0x28] sm:$0xff] }
 0x3f1   : > { %2740 = vmatprep.mubr.msk.bf16.mxu0 %vm658_vm1, %v1105_v21 }
 0x3f2   : > { %2741 = vmatmul.mubr.msk.bf16.vlgmr.msra.gmra.mrb[24].mxu0 %vm658_vm1, %v1106_v18 }
 0x3f3   : > { %2887 = vmatpush3.bf16.msra.mxu0 %v3818_v4  ;;  %v1050_v4 = vpop.xlane.xlu0 %1049 }
 0x3f4   : > { %1091 = vadd.xlane.f32.xlu0 %v1090_v22  ;;  %2889 = vmatprep.subr.bf16.mxu0 %v3822_v7 }
 0x3f7   : > { %2891 = vmatpush3.bf16.msra.mxu0 %v3822_v7  ;;  %v1062_v7 = vsub.f32 %v3792_v53, %v1050_v4 }
 0x3f8   : > { %2788 = vmatprep.subr.bf16.mxu0 %v3882_v24 }
 0x3f9   : > { %1482 = vrot.lane.b32.xlu1 %v3706_v48, %s3428_s25  ;;  %v1075_v27 = vmul.f32 1.442695, %v1062_v7 }
 0x3fb   : > { %3108 = vpow2.f32 %v1075_v27 }
 0x3fd   : > { %1486 = vrot.lane.b32.xlu1 %v3718_v59, %s3428_s25 }
 0x401   : > { %1488 = vrot.lane.b32.xlu1 %v3716_v56, %s3428_s25 }
 0x405   : > { %1643 = vrot.lane.b32.xlu1 %v3700_v33, %s3428_s25  ;;  %v3899_v55 = vpop.eup %3108 }
 0x40a   : > { %1484 = vrot.lane.b32.xlu0 %v3704_v45, %s3428_s25 }
 0x414   : > { %v1047_v29 = vpop.xlane.xlu1 %1046 }
 0x415   : > { %v1061_v30 = vsub.f32 %v3786_v51, %v1047_v29 }
 0x417   : > { %v1073_v31 = vmul.f32 1.442695, %v1061_v30 }
 0x418   : > { %v1053_v32 = vpop.xlane.xlu1 %1052 }
 0x419   : > { %3110 = vpow2.f32 %v1073_v31  ;;  %v1063_v36 = vsub.f32 %v3784_v50, %v1053_v32 }
 0x41b   : > { %v1077_v37 = vmul.f32 1.442695, %v1063_v36 }
 0x41c   : > { %v1056_v41 = vpop.xlane.xlu1 %1055 }
 0x41d   : > { %v1064_v42 = vsub.f32 %v3788_v52, %v1056_v41  ;;  %3112 = vpow2.f32 %v1077_v37 }
 0x41f   : > { %v1079_v54 = vmul.f32 1.442695, %v1064_v42 }
 0x421   : > { %3114 = vpow2.f32 %v1079_v54 }
 0x423   : > { %v3901_v53 = vpop.eup %3110 }
 0x424   : > { %v1107_v51 = vpack.c.bf16 %v3899_v55, %v3901_v53 }
 0x426   : > { %2744 = vmatprep.mubr.msk.bf16.mxu0 %vm658_vm1, %v1107_v51 }
 0x427   : > { %v3906_v57 = vpop.eup %3112 }
 0x42b   : > { %v3908_v58 = vpop.eup %3114 }
 0x42c   : > { %v1108_v50 = vpack.c.bf16 %v3908_v58, %v3906_v57 }
 0x42e   : > { %2745 = vmatmul.mubr.msk.bf16.gmra.mrb[28].mxu0 %vm658_vm1, %v1108_v50 }
 0x46f   : > { %v3913_v52 = vpop.f32.mrb[16].mxu0 }
 0x470   : > { %v3915_v61 = vpop.f32.mrb[17].mxu0 }
 0x471   : > { %v3917_v62 = vpop.f32.mrb[18].mxu0  ;;  %v1089_v0 = vpop.xlane.xlu1 %1088 }
 0x472   : > { %v3919_v63 = vpop.f32.mrb[19].mxu0 }
 0x475   : > { %v1083_v35 = vpop.xlane.xlu1 %1082 }
 0x476   : > { %3116 = vrcp.f32 %v1083_v35 }
 0x479   : > { %v1483_v40 = vpop.permute.xlu1 %1482 }
 0x47d   : > { %v1086_v6 = vpop.xlane.xlu0 %1085  ;;  %v1487_v10 = vpop.permute.xlu1 %1486 }
 0x47e   : > { %3118 = vrcp.f32 %v1086_v6 }
 0x47f   : > { %3120 = vrcp.f32 %v1089_v0 }
 0x480   : > { %v3117_v44 = vpop.eup %3116 }
 0x481   : > { %v1092_v8 = vpop.xlane.xlu0 %1091  ;;  %v1489_v47 = vpop.permute.xlu1 %1488 }
 0x482   : > { %3122 = vrcp.f32 %v1092_v8 }
 0x485   : > { %v1644_v22 = vpop.permute.xlu1 %1643  ;;  %v1485_v4 = vpop.permute.xlu0 %1484 }
 0x488   : > { %v3119_v15 = vpop.eup %3118 }
 0x489   : > { %v3121_v16 = vpop.eup %3120 }
 0x48c   : > { %v3123_v19 = vpop.eup %3122 }
 0x4b5   : > { %v3921_v34 = vpop.f32.mrb[20].mxu0 }
 0x4b6   : > { %v3923_v1 = vpop.f32.mrb[21].mxu0 }
 0x4b7   : > { %v3925_v2 = vpop.f32.mrb[22].mxu0 }
 0x4b8   : > { %v3927_v5 = vpop.f32.mrb[23].mxu0 }
 0x4c5   : > { %v2742_v11 = vpop.f32.mrb[24].mxu0 }
 0x4c6   : > { %v1171_v12 = vpop.f32.mrb[25].mxu0  ;;  %v1212_v18 = vmul.f32 %v3121_v16, %v2742_v11 }
 0x4c7   : > { %v1210_v13 = vmul.f32 %v3117_v44, %v1171_v12  ;;  %v2743_v14 = vpop.f32.mrb[26].mxu0 }
 0x4c8   : > { %v1174_v46 = vpop.f32.mrb[27].mxu0  ;;  %v1213_v21 = vmul.f32 %v3123_v19, %v2743_v14  ;;  %v1096_v14 = vsel %vm658_vm1, %v3899_v55, 0.0  ;;  %v829_v55 = vsel %vm658_vm1, %v3863_v9, 0.0  ;;  %v838_v9 = vsel %vm658_vm1, %v3858_v39, 0.0 }
 0x4c9   : > { %v1211_v17 = vmul.f32 %v3119_v15, %v1174_v46  ;;  %2756 = vmatprep.mubr.msk.f32.mxu0 %vm690_vm0, %v1210_v13  ;;  %v1093_v15 = vsel %vm658_vm1, %v3901_v53, 0.0  ;;  %v820_v53 = vsel %vm658_vm1, %v3838_v25, 0.0  ;;  %v939_v25 = vld [vmem:[#allocation11 + $0x8] sm:$0xff] }
 0x4cb   : > { %2757 = vmatmul.mubr.msk.f32.vlgmr.msra.gmra.mrb[32].mxu0 %vm690_vm0, %v1211_v17 }
 0x4cc   : > { %2789 = vmatpush3.bf16.msra.mxu0 %v3882_v24  ;;  %2759 = vmatprep.mubr.msk.f32.mxu0 %vm690_vm0, %v1212_v18 }
 0x4cd   : > { %2790 = vmatprep.subr.bf16.mxu0 %v1481_v20 }
 0x4cf   : > { %2760 = vmatmul.mubr.msk.f32.gmra.mrb[34].mxu0 %vm690_vm0, %v1213_v21 }
 0x4d0   : > { %2791 = vmatpush3.bf16.msra.mxu0 %v1481_v20  ;;  %2792 = vmatprep.mubr.msk.bf16.mxu0 %vm690_vm0, %v1483_v40 }
 0x4d1   : > { %2800 = vmatprep.subr.bf16.mxu0 %v1644_v22 }
 0x4d3   : > { %2793 = vmatmul.mubr.msk.bf16.vlgmr.msra.gmra.mrb[36].mxu0 %vm690_vm0, %v1485_v4 }
 0x4d4   : > { %2801 = vmatpush3.bf16.msra.mxu0 %v1644_v22  ;;  %2796 = vmatprep.mubr.msk.bf16.mxu0 %vm690_vm0, %v1487_v10 }
 0x4db   : > { %2797 = vmatmul.mubr.msk.bf16.gmra.mrb[40].mxu0 %vm690_vm0, %v1489_v47 }
 0x501   : > { %v3938_v24 = vpop.f32.mrb[28].mxu0 }
 0x502   : > { %v3940_v7 = vpop.f32.mrb[29].mxu0 }
 0x503   : > { %v3942_v27 = vpop.f32.mrb[30].mxu0 }
 0x504   : > { %v3944_v29 = vpop.f32.mrb[31].mxu0 }
 0x59e   : > { %v3946_v30 = vpop.f32.mrb[32].mxu0 }
 0x59f   : > { %v3948_v31 = vpop.f32.mrb[33].mxu0 }
 0x5a2   : > { %v3950_v32 = vpop.f32.mrb[34].mxu0 }
 0x5a3   : > { %v3952_v36 = vpop.f32.mrb[35].mxu0 }
 0x5a6   : > { %v3954_v37 = vpop.f32.mrb[36].mxu0 }
 0x5a7   : > { %v3956_v41 = vpop.f32.mrb[37].mxu0  ;;  %v1573_v42 = vsel %vm658_vm1, %v3954_v37, -inf }
 0x5a8   : > { %1574 = vmax.xlane.f32.xlu0 %v1573_v42  ;;  %v3960_v54 = vpop.f32.mrb[38].mxu0  ;;  %v1567_v0 = vsel %vm658_vm1, %v3956_v41, -inf }
 0x5a9   : > { %v3962_v51 = vpop.f32.mrb[39].mxu0  ;;  %v1576_v40 = vsel %vm658_vm1, %v3960_v54, -inf }
 0x5aa   : > { %v1570_v50 = vsel %vm658_vm1, %v3962_v51, -inf }
 0x5ab   : > { %1571 = vmax.xlane.f32.xlu1 %v1570_v50 }
 0x5ac   : > { %1568 = vmax.xlane.f32.xlu0 %v1567_v0 }
 0x5ae   : > { %v3968_v35 = vpop.f32.mrb[40].mxu0 }
 0x5af   : > { %v3970_v6 = vpop.f32.mrb[41].mxu0  ;;  %v1585_v8 = vsel %vm658_vm1, %v3968_v35, -inf }
 0x5b0   : > { %1577 = vmax.xlane.f32.xlu0 %v1576_v40  ;;  %1586 = vmax.xlane.f32.xlu1 %v1585_v8  ;;  %v3976_v10 = vpop.f32.mrb[42].mxu0  ;;  %v1579_v44 = vsel %vm658_vm1, %v3970_v6, -inf }
 0x5b1   : > { %v3978_v11 = vpop.f32.mrb[43].mxu0  ;;  %v1588_v12 = vsel %vm658_vm1, %v3976_v10, -inf }
 0x5b2   : > { %v1582_v13 = vsel %vm658_vm1, %v3978_v11, -inf }
 0x5b4   : > { %1580 = vmax.xlane.f32.xlu1 %v1579_v44  ;;  %1589 = vmax.xlane.f32.xlu0 %v1588_v12 }
 0x5b8   : > { %1583 = vmax.xlane.f32.xlu0 %v1582_v13 }
 0x5c5   : > { %1647 = vrot.lane.b32.xlu1 %v3708_v49, %s3428_s25 }
 0x5c9   : > { %1649 = vrot.lane.b32.xlu1 %v3720_v60, %s3428_s25 }
 0x5cd   : > { %1893 = vrot.lane.b32.xlu1 %v3704_v45, %s3429_s27  ;;  %v817_v45 = vsel %vm658_vm1, %v3836_v23, 0.0  ;;  %v835_v23 = vsel %vm658_vm1, %v3856_v3, 0.0 }
 0x5ce   : > { %1645 = vrot.lane.b32.xlu0 %v3702_v38, %s3428_s25 }
 0x5d1   : > { %1897 = vrot.lane.b32.xlu1 %v3716_v56, %s3429_s27  ;;  %v1099_v56 = vsel %vm658_vm1, %v3906_v57, 0.0  ;;  %v826_v57 = vsel %vm658_vm1, %v3845_v28, 0.0 }
 0x5d2   : > { %1891 = vrot.lane.b32.xlu0 %v3706_v48, %s3429_s27  ;;  %v823_v48 = vsel %vm658_vm1, %v3843_v26, 0.0  ;;  %v832_v26 = vsel %vm658_vm1, %v3865_v43, 0.0 }
 0x5d6   : > { %1895 = vrot.lane.b32.xlu0 %v3718_v59, %s3429_s27  ;;  %v1102_v59 = vsel %vm658_vm1, %v3908_v58, 0.0  ;;  %v938_v58 = vld [vmem:[#allocation11] sm:$0xff] }
 0x5d7   : > { %v4024_v46 = vpack.c.bf16 %v939_v25, %v938_v58  ;;  %v1889_v25 = vld [vmem:[#allocation3 + $0x30] sm:$0xff] }
 0x5d9   : > { %2893 = vmatprep.subr.bf16.mxu1 %v4024_v46 }
 0x5f5   : > { %1097 = vadd.xlane.f32.xlu1 %v1096_v14  ;;  %1094 = vadd.xlane.f32.xlu0 %v1093_v15 }
 0x5f9   : > { %818 = vadd.xlane.f32.xlu1 %v817_v45  ;;  %1100 = vadd.xlane.f32.xlu0 %v1099_v56 }
 0x5fd   : > { %824 = vadd.xlane.f32.xlu1 %v823_v48  ;;  %1103 = vadd.xlane.f32.xlu0 %v1102_v59 }
 0x601   : > { %830 = vadd.xlane.f32.xlu1 %v829_v55  ;;  %821 = vadd.xlane.f32.xlu0 %v820_v53 }
 0x605   : > { %836 = vadd.xlane.f32.xlu1 %v835_v23  ;;  %827 = vadd.xlane.f32.xlu0 %v826_v57 }
 0x609   : > { %833 = vadd.xlane.f32.xlu0 %v832_v26 }
 0x60d   : > { %839 = vadd.xlane.f32.xlu0 %v838_v9 }
 0x616   : > { %2052 = vrot.lane.b32.xlu1 %v3700_v33, %s3429_s27 }
 0x635   : > { %v1575_v28 = vpop.xlane.xlu0 %1574 }
 0x636   : > { %v1593_v3 = vsub.f32 %v3954_v37, %v1575_v28 }
 0x638   : > { %v1603_v16 = vmul.f32 1.442695, %v1593_v3  ;;  %v1572_v17 = vpop.xlane.xlu1 %1571 }
 0x639   : > { %v1592_v43 = vsub.f32 %v3962_v51, %v1572_v17  ;;  %v1569_v47 = vpop.xlane.xlu0 %1568  ;;  %v1890_v17 = vld [vmem:[#allocation3 + $0x38] sm:$0xff] }
 0x63a   : > { %3124 = vpow2.f32 %v1603_v16  ;;  %v1591_v39 = vsub.f32 %v3956_v41, %v1569_v47 }
 0x63b   : > { %v1601_v18 = vmul.f32 1.442695, %v1592_v43 }
 0x63c   : > { %v1599_v19 = vmul.f32 1.442695, %v1591_v39 }
 0x63d   : > { %3126 = vpow2.f32 %v1601_v18  ;;  %v1578_v20 = vpop.xlane.xlu0 %1577  ;;  %v1587_v21 = vpop.xlane.xlu1 %1586 }
 0x63e   : > { %3128 = vpow2.f32 %v1599_v19  ;;  %v1594_v22 = vsub.f32 %v3960_v54, %v1578_v20  ;;  %v1597_v33 = vsub.f32 %v3968_v35, %v1587_v21 }
 0x640   : > { %v1605_v4 = vmul.f32 1.442695, %v1594_v22  ;;  %v1611_v37 = vmul.f32 1.442695, %v1597_v33 }
 0x641   : > { %v1590_v42 = vpop.xlane.xlu0 %1589  ;;  %v1581_v50 = vpop.xlane.xlu1 %1580 }
 0x642   : > { %3130 = vpow2.f32 %v1605_v4  ;;  %v1598_v51 = vsub.f32 %v3976_v10, %v1590_v42  ;;  %v1595_v0 = vsub.f32 %v3970_v6, %v1581_v50  ;;  %v940_v42 = vld [vmem:[#allocation11 + $0x10] sm:$0xff]  ;;  %v941_v50 = vld [vmem:[#allocation11 + $0x18] sm:$0xff] }
 0x643   : > { %3132 = vpow2.f32 %v1611_v37 }
 0x644   : > { %v3125_v41 = vpop.eup %3124  ;;  %v1613_v40 = vmul.f32 1.442695, %v1598_v51  ;;  %v1607_v8 = vmul.f32 1.442695, %v1595_v0 }
 0x645   : > { %v1584_v44 = vpop.xlane.xlu0 %1583  ;;  %v1621_v12 = vsel %vm658_vm1, %v3125_v41, 0.0  ;;  %v1648_v15 = vpop.permute.xlu1 %1647 }
 0x646   : > { %3134 = vpow2.f32 %v1613_v40  ;;  %v1596_v54 = vsub.f32 %v3978_v11, %v1584_v44  ;;  %1622 = vadd.xlane.f32.xlu1 %v1621_v12  ;;  %v2896_v12 = vpack.c.bf16 %v941_v50, %v940_v42 }
 0x647   : > { %v3127_v35 = vpop.eup %3126  ;;  %3136 = vpow2.f32 %v1607_v8 }
 0x648   : > { %v3129_v13 = vpop.eup %3128  ;;  %v1609_v14 = vmul.f32 1.442695, %v1596_v54  ;;  %v1618_v26 = vsel %vm658_vm1, %v3127_v35, 0.0  ;;  %v1748_v54 = vld [vmem:[#allocation11 + $0x40] sm:$0xff] }
 0x649   : > { %v1646_v45 = vpop.permute.xlu0 %1645  ;;  %v1615_v10 = vsel %vm658_vm1, %v3129_v13, 0.0  ;;  %v1639_v6 = vpack.c.bf16 %v3127_v35, %v3129_v13  ;;  %v1650_v53 = vpop.permute.xlu1 %1649  ;;  %v1749_v35 = vld [vmem:[#allocation11 + $0x48] sm:$0xff] }
 0x64a   : > { %3138 = vpow2.f32 %v1609_v14  ;;  %1616 = vadd.xlane.f32.xlu1 %v1615_v10  ;;  %2802 = vmatprep.subr.bf16.mxu0 %v1646_v45 }
 0x64b   : > { %2803 = vmatpush3.bf16.msra.mxu0 %v1646_v45  ;;  %2808 = vmatprep.mubr.msk.bf16.mxu0 %vm658_vm1, %v1639_v6 }
 0x64c   : > { %v3131_v56 = vpop.eup %3130  ;;  %2804 = vmatprep.subr.bf16.mxu0 %v1648_v15 }
 0x64d   : > { %v3133_v48 = vpop.eup %3132  ;;  %v1640_v11 = vpack.c.bf16 %v3131_v56, %v3125_v41  ;;  %v1624_v59 = vsel %vm658_vm1, %v3131_v56, 0.0  ;;  %v1892_v47 = vpop.permute.xlu0 %1891 }
 0x64e   : > { %1625 = vadd.xlane.f32.xlu0 %v1624_v59  ;;  %v1633_v55 = vsel %vm658_vm1, %v3133_v48, 0.0  ;;  %v1894_v39 = vpop.permute.xlu1 %1893 }
 0x64f   : > { %1634 = vadd.xlane.f32.xlu1 %v1633_v55  ;;  %2805 = vmatpush3.bf16.msra.mxu0 %v1648_v15 }
 0x650   : > { %v3135_v23 = vpop.eup %3134  ;;  %2806 = vmatprep.subr.bf16.mxu0 %v1650_v53 }
 0x651   : > { %v3137_v57 = vpop.eup %3136  ;;  %v1642_v9 = vpack.c.bf16 %v3135_v23, %v3133_v48  ;;  %v1636_v3 = vsel %vm658_vm1, %v3135_v23, 0.0  ;;  %v1896_v18 = vpop.permute.xlu0 %1895 }
 0x652   : > { %1619 = vadd.xlane.f32.xlu0 %v1618_v26  ;;  %v1627_v58 = vsel %vm658_vm1, %v3137_v57, 0.0  ;;  %v1898_v19 = vpop.permute.xlu1 %1897 }
 0x653   : > { %1628 = vadd.xlane.f32.xlu1 %v1627_v58  ;;  %2807 = vmatpush3.bf16.msra.mxu0 %v1650_v53 }
 0x654   : > { %v3139_v28 = vpop.eup %3138  ;;  %2836 = vmatprep.subr.bf16.mxu0 %v1889_v25 }
 0x655   : > { %v1641_v16 = vpack.c.bf16 %v3139_v28, %v3137_v57  ;;  %v1630_v43 = vsel %vm658_vm1, %v3139_v28, 0.0 }
 0x656   : > { %1637 = vadd.xlane.f32.xlu0 %v1636_v3  ;;  %2809 = vmatmul.mubr.msk.bf16.vlgmr.msra.gmra.mrb[44].mxu0 %vm658_vm1, %v1640_v11  ;;  %v1751_v11 = vld [vmem:[#allocation11 + $0x58] sm:$0xff] }
 0x657   : > { %2812 = vmatprep.mubr.msk.bf16.mxu0 %vm658_vm1, %v1641_v16  ;;  %2837 = vmatpush3.bf16.msra.mxu0 %v1889_v25 }
 0x658   : > { %2838 = vmatprep.subr.bf16.mxu0 %v1890_v17 }
 0x65a   : > { %1631 = vadd.xlane.f32.xlu0 %v1630_v43 }
 0x65b   : > { %2839 = vmatpush3.bf16.msra.mxu0 %v1890_v17 }
 0x65e   : > { %2813 = vmatmul.mubr.msk.bf16.gmra.mrb[48].mxu0 %vm658_vm1, %v1642_v9 }
 0x65f   : > { %2840 = vmatprep.mubr.msk.bf16.mxu0 %vm690_vm0, %v1892_v47 }
 0x666   : > { %2841 = vmatmul.mubr.msk.bf16.vlgmr.msra.gmra.mrb[52].mxu0 %vm690_vm0, %v1894_v39 }
 0x667   : > { %2844 = vmatprep.mubr.msk.bf16.mxu0 %vm690_vm0, %v1896_v18 }
 0x66e   : > { %2845 = vmatmul.mubr.msk.bf16.gmra.mrb[56].mxu0 %vm690_vm0, %v1898_v19 }
 0x682   : > { %v1095_v20 = vpop.xlane.xlu0 %1094  ;;  %v1098_v21 = vpop.xlane.xlu1 %1097 }
 0x683   : > { %3140 = vrcp.f32 %v1095_v20 }
 0x684   : > { %3142 = vrcp.f32 %v1098_v21 }
 0x686   : > { %v1101_v22 = vpop.xlane.xlu0 %1100  ;;  %v819_v33 = vpop.xlane.xlu1 %818 }
 0x687   : > { %3144 = vrcp.f32 %v1101_v22 }
 0x688   : > { %3146 = vrcp.f32 %v819_v33 }
 0x68a   : > { %v1104_v4 = vpop.xlane.xlu0 %1103  ;;  %v825_v37 = vpop.xlane.xlu1 %824 }
 0x68b   : > { %3148 = vrcp.f32 %v1104_v4 }
 0x68c   : > { %3150 = vrcp.f32 %v825_v37 }
 0x68d   : > { %v3141_v51 = vpop.eup %3140 }
 0x68e   : > { %v3143_v0 = vpop.eup %3142  ;;  %v822_v41 = vpop.xlane.xlu0 %821  ;;  %v1214_v8 = vmul.f32 %v3141_v51, %v3940_v7  ;;  %v2900_v7 = vpack.c.bf16 %v1749_v35, %v1748_v54 }
 0x68f   : > { %v831_v40 = vpop.xlane.xlu1 %830  ;;  %v1215_v44 = vmul.f32 %v3143_v0, %v3944_v29  ;;  %3152 = vrcp.f32 %v822_v41 }
 0x690   : > { %2762 = vmatprep.mubr.msk.f32.mxu1 %vm690_vm0, %v1214_v8  ;;  %3154 = vrcp.f32 %v831_v40 }
 0x691   : > { %v3145_v13 = vpop.eup %3144  ;;  %2763 = vmatmul.mubr.msk.f32.vlgmr.msra.gmra.mrb[24].mxu1 %vm690_vm0, %v1215_v44 }
 0x692   : > { %v828_v14 = vpop.xlane.xlu0 %827  ;;  %v1216_v15 = vmul.f32 %v3145_v13, %v3938_v24  ;;  %2895 = vmatpush3.bf16.msra.mxu1 %v4024_v46  ;;  %v3147_v29 = vpop.eup %3146  ;;  %v1750_v24 = vld [vmem:[#allocation11 + $0x50] sm:$0xff] }
 0x693   : > { %3156 = vrcp.f32 %v828_v14  ;;  %v837_v45 = vpop.xlane.xlu1 %836  ;;  %2897 = vmatprep.subr.bf16.mxu1 %v2896_v12  ;;  %v930_v48 = vmul.f32 %v3147_v29, %v3915_v61  ;;  %v2904_v23 = vpack.c.bf16 %v1751_v11, %v1750_v24 }
 0x694   : > { %2765 = vmatprep.mubr.msk.f32.mxu1 %vm690_vm0, %v1216_v15  ;;  %3158 = vrcp.f32 %v837_v45 }
 0x695   : > { %v3149_v10 = vpop.eup %3148 }
 0x696   : > { %v834_v6 = vpop.xlane.xlu0 %833  ;;  %v1217_v56 = vmul.f32 %v3149_v10, %v3942_v27  ;;  %2899 = vmatpush3.bf16.msra.mxu1 %v2896_v12  ;;  %v3151_v46 = vpop.eup %3150 }
 0x697   : > { %3160 = vrcp.f32 %v834_v6  ;;  %2901 = vmatprep.subr.bf16.mxu1 %v2900_v7  ;;  %v932_v27 = vmul.f32 %v3151_v46, %v3913_v52  ;;  %v2053_v25 = vpop.permute.xlu1 %2052 }
 0x698   : > { %2766 = vmatmul.mubr.msk.f32.gmra.mrb[26].mxu1 %vm690_vm0, %v1217_v56 }
 0x699   : > { %v3153_v59 = vpop.eup %3152  ;;  %2776 = vmatprep.mubr.msk.f32.mxu1 %vm690_vm0, %v930_v48 }
 0x69a   : > { %v931_v55 = vmul.f32 %v3153_v59, %v3919_v63  ;;  %v840_v53 = vpop.xlane.xlu0 %839  ;;  %v3155_v57 = vpop.eup %3154 }
 0x69b   : > { %3162 = vrcp.f32 %v840_v53  ;;  %v934_v9 = vmul.f32 %v3155_v57, %v3923_v1 }
 0x69c   : > { %2777 = vmatmul.mubr.msk.f32.vlgmr.msra.gmra.mrb[28].mxu1 %vm690_vm0, %v931_v55 }
 0x69d   : > { %v3157_v61 = vpop.eup %3156  ;;  %2903 = vmatpush3.bf16.msra.mxu1 %v2900_v7  ;;  %2779 = vmatprep.mubr.msk.f32.mxu1 %vm690_vm0, %v932_v27 }
 0x69e   : > { %2905 = vmatprep.subr.bf16.mxu1 %v2904_v23  ;;  %v933_v26 = vmul.f32 %v3157_v61, %v3917_v62  ;;  %v3159_v58 = vpop.eup %3158 }
 0x69f   : > { %v936_v28 = vmul.f32 %v3159_v58, %v3921_v34 }
 0x6a0   : > { %2780 = vmatmul.mubr.msk.f32.gmra.mrb[30].mxu1 %vm690_vm0, %v933_v26 }
 0x6a1   : > { %v3161_v63 = vpop.eup %3160  ;;  %2907 = vmatpush3.bf16.msra.mxu1 %v2904_v23  ;;  %2782 = vmatprep.mubr.msk.f32.mxu1 %vm690_vm0, %v934_v9 }
 0x6a2   : > { %2848 = vmatprep.subr.bf16.mxu1 %v2053_v25  ;;  %v935_v52 = vmul.f32 %v3161_v63, %v3927_v5 }
 0x6a4   : > { %2783 = vmatmul.mubr.msk.f32.gmra.mrb[24].mxu1 %vm690_vm0, %v935_v52 }
 0x6a5   : > { %v3163_v3 = vpop.eup %3162  ;;  %2785 = vmatprep.mubr.msk.f32.mxu1 %vm690_vm0, %v936_v28 }
 0x6a6   : > { %v937_v62 = vmul.f32 %v3163_v3, %v3925_v2 }
 0x6a8   : > { %2786 = vmatmul.mubr.msk.f32.gmra.mrb[26].mxu1 %vm690_vm0, %v937_v62 }
 0x6d3   : > { %v1623_v1 = vpop.xlane.xlu1 %1622 }
 0x6d7   : > { %v1617_v17 = vpop.xlane.xlu1 %1616 }
 0x6d8   : > { %3164 = vrcp.f32 %v1617_v17 }
 0x6db   : > { %v1626_v16 = vpop.xlane.xlu0 %1625 }
 0x6dc   : > { %v1635_v47 = vpop.xlane.xlu1 %1634 }
 0x6df   : > { %v1620_v43 = vpop.xlane.xlu0 %1619 }
 0x6e0   : > { %3166 = vrcp.f32 %v1620_v43  ;;  %v1629_v5 = vpop.xlane.xlu1 %1628 }
 0x6e1   : > { %3168 = vrcp.f32 %v1623_v1 }
 0x6e2   : > { %3170 = vrcp.f32 %v1626_v16  ;;  %v3165_v19 = vpop.eup %3164 }
 0x6e3   : > { %v1638_v39 = vpop.xlane.xlu0 %1637  ;;  %3172 = vrcp.f32 %v1629_v5 }
 0x6e7   : > { %v1632_v34 = vpop.xlane.xlu0 %1631 }
 0x6e8   : > { %3174 = vrcp.f32 %v1632_v34 }
 0x6e9   : > { %3176 = vrcp.f32 %v1635_v47 }
 0x6ea   : > { %v3167_v22 = vpop.eup %3166  ;;  %3178 = vrcp.f32 %v1638_v39 }
 0x6eb   : > { %v3169_v4 = vpop.eup %3168 }
 0x6ec   : > { %v3171_v50 = vpop.eup %3170 }
 0x6ed   : > { %v3173_v41 = vpop.eup %3172 }
 0x6f2   : > { %v3175_v12 = vpop.eup %3174 }
 0x6f3   : > { %v3177_v35 = vpop.eup %3176 }
 0x6f4   : > { %v3179_v15 = vpop.eup %3178 }
 0x729   : > { %v2810_v18 = vpop.f32.mrb[44].mxu0 }
 0x72a   : > { %v1701_v20 = vpop.f32.mrb[45].mxu0  ;;  %v1742_v42 = vmul.f32 %v3169_v4, %v2810_v18 }
 0x72b   : > { %v1740_v2 = vmul.f32 %v3165_v19, %v1701_v20  ;;  %v2811_v21 = vpop.f32.mrb[46].mxu0 }
 0x72c   : > { %v1704_v33 = vpop.f32.mrb[47].mxu0  ;;  %v1743_v51 = vmul.f32 %v3171_v50, %v2811_v21 }
 0x72d   : > { %v1741_v37 = vmul.f32 %v3167_v22, %v1704_v33  ;;  %2824 = vmatprep.mubr.msk.f32.mxu1 %vm690_vm0, %v1740_v2 }
 0x72f   : > { %2825 = vmatmul.mubr.msk.f32.vlgmr.msra.gmra.mrb[28].mxu1 %vm690_vm0, %v1741_v37 }
 0x730   : > { %2849 = vmatpush3.bf16.msra.mxu1 %v2053_v25  ;;  %2827 = vmatprep.mubr.msk.f32.mxu1 %vm690_vm0, %v1742_v42 }
 0x731   : > { %v2814_v0 = vpop.f32.mrb[48].mxu0 }
 0x732   : > { %v1717_v40 = vpop.f32.mrb[49].mxu0  ;;  %v1746_v14 = vmul.f32 %v3177_v35, %v2814_v0 }
 0x733   : > { %v1744_v8 = vmul.f32 %v3173_v41, %v1717_v40  ;;  %v2815_v44 = vpop.f32.mrb[50].mxu0  ;;  %2828 = vmatmul.mubr.msk.f32.gmra.mrb[30].mxu1 %vm690_vm0, %v1743_v51 }
 0x734   : > { %v1720_v54 = vpop.f32.mrb[51].mxu0  ;;  %v1747_v45 = vmul.f32 %v3179_v15, %v2815_v44 }
 0x735   : > { %v1745_v13 = vmul.f32 %v3175_v12, %v1720_v54  ;;  %2830 = vmatprep.mubr.msk.f32.mxu1 %vm690_vm0, %v1744_v8 }
 0x737   : > { %2831 = vmatmul.mubr.msk.f32.gmra.mrb[24].mxu1 %vm690_vm0, %v1745_v13 }
 0x738   : > { %2833 = vmatprep.mubr.msk.f32.mxu1 %vm690_vm0, %v1746_v14 }
 0x739   : > { %v2842_v7 = vpop.f32.mrb[52].mxu0 }
 0x73a   : > { %v1945_v29 = vpop.f32.mrb[53].mxu0  ;;  %v1982_v10 = vsel %vm658_vm1, %v2842_v7, -inf }
 0x73b   : > { %1983 = vmax.xlane.f32.xlu1 %v1982_v10  ;;  %2834 = vmatmul.mubr.msk.f32.gmra.mrb[26].mxu1 %vm690_vm0, %v1747_v45  ;;  %v2843_v6 = vpop.f32.mrb[54].mxu0  ;;  %v1976_v56 = vsel %vm658_vm1, %v1945_v29, -inf }
 0x73c   : > { %1977 = vmax.xlane.f32.xlu0 %v1976_v56  ;;  %v1948_v48 = vpop.f32.mrb[55].mxu0  ;;  %v1985_v11 = vsel %vm658_vm1, %v2843_v6, -inf  ;;  %v2158_v56 = vld [vmem:[#allocation11 + $0x68] sm:$0xff] }
 0x73d   : > { %v1979_v24 = vsel %vm658_vm1, %v1948_v48, -inf }
 0x73f   : > { %1980 = vmax.xlane.f32.xlu1 %v1979_v24  ;;  %v2159_v24 = vld [vmem:[#allocation11 + $0x70] sm:$0xff] }
 0x740   : > { %1986 = vmax.xlane.f32.xlu0 %v1985_v11  ;;  %v2160_v11 = vld [vmem:[#allocation11 + $0x78] sm:$0xff] }
 0x741   : > { %v2846_v46 = vpop.f32.mrb[56].mxu0 }
 0x742   : > { %v1961_v59 = vpop.f32.mrb[57].mxu0  ;;  %v1994_v55 = vsel %vm658_vm1, %v2846_v46, -inf }
 0x743   : > { %1995 = vmax.xlane.f32.xlu1 %v1994_v55  ;;  %v2847_v53 = vpop.f32.mrb[58].mxu0  ;;  %v1988_v57 = vsel %vm658_vm1, %v1961_v59, -inf }
 0x744   : > { %v1964_v23 = vpop.f32.mrb[59].mxu0  ;;  %v1997_v27 = vsel %vm658_vm1, %v2847_v53, -inf }
 0x745   : > { %1998 = vmax.xlane.f32.xlu0 %v1997_v27  ;;  %v1991_v61 = vsel %vm658_vm1, %v1964_v23, -inf }
 0x747   : > { %1989 = vmax.xlane.f32.xlu1 %v1988_v57 }
 0x749   : > { %1992 = vmax.xlane.f32.xlu0 %v1991_v61 }
 0x758   : > { %2056 = vrot.lane.b32.xlu1 %v3708_v49, %s3429_s27 }
 0x75c   : > { %2058 = vrot.lane.b32.xlu1 %v3720_v60, %s3429_s27 }
 0x75f   : > { %2054 = vrot.lane.b32.xlu0 %v3702_v38, %s3429_s27 }
 0x7c8   : > { %v1984_v26 = vpop.xlane.xlu1 %1983 }
 0x7c9   : > { %v2002_v9 = vsub.f32 %v2842_v7, %v1984_v26  ;;  %v1978_v58 = vpop.xlane.xlu0 %1977 }
 0x7ca   : > { %v2000_v63 = vsub.f32 %v1945_v29, %v1978_v58 }
 0x7cb   : > { %v2012_v25 = vmul.f32 1.442695, %v2002_v9 }
 0x7cc   : > { %v2008_v52 = vmul.f32 1.442695, %v2000_v63  ;;  %v1981_v28 = vpop.xlane.xlu1 %1980 }
 0x7cd   : > { %v2001_v3 = vsub.f32 %v1948_v48, %v1981_v28  ;;  %v1987_v62 = vpop.xlane.xlu0 %1986 }
 0x7ce   : > { %3180 = vpow2.f32 %v2008_v52  ;;  %v2003_v1 = vsub.f32 %v2843_v6, %v1987_v62  ;;  %v2157_v6 = vld [vmem:[#allocation11 + $0x60] sm:$0xff] }
 0x7cf   : > { %v2010_v16 = vmul.f32 1.442695, %v2001_v3  ;;  %3182 = vpow2.f32 %v2012_v25  ;;  %v2908_v48 = vpack.c.bf16 %v2158_v56, %v2157_v6 }
 0x7d0   : > { %v2014_v49 = vmul.f32 1.442695, %v2003_v1  ;;  %v1996_v17 = vpop.xlane.xlu1 %1995 }
 0x7d1   : > { %3184 = vpow2.f32 %v2010_v16  ;;  %v2006_v60 = vsub.f32 %v2846_v46, %v1996_v17  ;;  %v2912_v46 = vpack.c.bf16 %v2160_v11, %v2159_v24 }
 0x7d2   : > { %3186 = vpow2.f32 %v2014_v49  ;;  %v1999_v43 = vpop.xlane.xlu0 %1998 }
 0x7d3   : > { %v2020_v38 = vmul.f32 1.442695, %v2006_v60  ;;  %v2007_v47 = vsub.f32 %v2847_v53, %v1999_v43 }
 0x7d4   : > { %v1990_v39 = vpop.xlane.xlu1 %1989 }
 0x7d5   : > { %v2022_v5 = vmul.f32 1.442695, %v2007_v47  ;;  %v2004_v34 = vsub.f32 %v1961_v59, %v1990_v39  ;;  %3188 = vpow2.f32 %v2020_v38 }
 0x7d6   : > { %v1993_v18 = vpop.xlane.xlu0 %1992 }
 0x7d7   : > { %3190 = vpow2.f32 %v2022_v5  ;;  %v2016_v19 = vmul.f32 1.442695, %v2004_v34  ;;  %v2005_v20 = vsub.f32 %v1964_v23, %v1993_v18 }
 0x7d8   : > { %v3181_v2 = vpop.eup %3180  ;;  %v2057_v4 = vpop.permute.xlu1 %2056 }
 0x7d9   : > { %3192 = vpow2.f32 %v2016_v19  ;;  %v2018_v21 = vmul.f32 1.442695, %v2005_v20  ;;  %v2024_v22 = vsel %vm658_vm1, %v3181_v2, 0.0  ;;  %v3183_v33 = vpop.eup %3182 }
 0x7da   : > { %2025 = vadd.xlane.f32.xlu0 %v2024_v22  ;;  %v2055_v37 = vpop.permute.xlu0 %2054  ;;  %v2030_v40 = vsel %vm658_vm1, %v3183_v33, 0.0 }
 0x7db   : > { %v3185_v42 = vpop.eup %3184  ;;  %3194 = vpow2.f32 %v2018_v21  ;;  %2850 = vmatprep.subr.bf16.mxu1 %v2055_v37 }
 0x7dc   : > { %v3187_v50 = vpop.eup %3186  ;;  %2851 = vmatpush3.bf16.msra.mxu1 %v2055_v37  ;;  %v2027_v51 = vsel %vm658_vm1, %v3185_v42, 0.0  ;;  %v2048_v0 = vpack.c.bf16 %v3185_v42, %v3181_v2  ;;  %v2059_v44 = vpop.permute.xlu1 %2058 }
 0x7dd   : > { %v2049_v41 = vpack.c.bf16 %v3187_v50, %v3183_v33  ;;  %2028 = vadd.xlane.f32.xlu1 %v2027_v51  ;;  %2852 = vmatprep.subr.bf16.mxu1 %v2057_v4  ;;  %v2033_v54 = vsel %vm658_vm1, %v3187_v50, 0.0 }
 0x7de   : > { %2031 = vadd.xlane.f32.xlu0 %v2030_v40  ;;  %2856 = vmatprep.mubr.msk.bf16.mxu1 %vm658_vm1, %v2048_v0 }
 0x7df   : > { %v3189_v8 = vpop.eup %3188 }
 0x7e0   : > { %2853 = vmatpush3.bf16.msra.mxu1 %v2057_v4  ;;  %v2042_v29 = vsel %vm658_vm1, %v3189_v8, 0.0 }
 0x7e1   : > { %v3191_v12 = vpop.eup %3190  ;;  %2854 = vmatprep.subr.bf16.mxu1 %v2059_v44 }
 0x7e2   : > { %2034 = vadd.xlane.f32.xlu0 %v2033_v54  ;;  %v2051_v35 = vpack.c.bf16 %v3191_v12, %v3189_v8  ;;  %v2045_v10 = vsel %vm658_vm1, %v3191_v12, 0.0 }
 0x7e3   : > { %v3193_v13 = vpop.eup %3192 }
 0x7e4   : > { %2855 = vmatpush3.bf16.msra.mxu1 %v2059_v44  ;;  %v2036_v14 = vsel %vm658_vm1, %v3193_v13, 0.0 }
 0x7e5   : > { %v3195_v15 = vpop.eup %3194  ;;  %2037 = vadd.xlane.f32.xlu1 %v2036_v14  ;;  %2909 = vmatprep.subr.bf16.mxu1 %v2908_v48 }
 0x7e6   : > { %v2039_v45 = vsel %vm658_vm1, %v3195_v15, 0.0  ;;  %v2050_v7 = vpack.c.bf16 %v3195_v15, %v3193_v13 }
 0x7e7   : > { %2040 = vadd.xlane.f32.xlu0 %v2039_v45  ;;  %2857 = vmatmul.mubr.msk.bf16.vlgmr.msra.gmra.mrb[32].mxu1 %vm658_vm1, %v2049_v41 }
 0x7e8   : > { %2860 = vmatprep.mubr.msk.bf16.mxu1 %vm658_vm1, %v2050_v7  ;;  %2911 = vmatpush3.bf16.msra.mxu1 %v2908_v48 }
 0x7e9   : > { %2043 = vadd.xlane.f32.xlu1 %v2042_v29  ;;  %2913 = vmatprep.subr.bf16.mxu1 %v2912_v46 }
 0x7eb   : > { %2046 = vadd.xlane.f32.xlu0 %v2045_v10 }
 0x7ec   : > { %2915 = vmatpush3.bf16.msra.mxu1 %v2912_v46 }
 0x7ef   : > { %2861 = vmatmul.mubr.msk.bf16.gmra.mrb[36].mxu1 %vm658_vm1, %v2051_v35 }
 0x867   : > { %v2026_v59 = vpop.xlane.xlu0 %2025 }
 0x868   : > { %3196 = vrcp.f32 %v2026_v59 }
 0x86a   : > { %v2029_v53 = vpop.xlane.xlu1 %2028 }
 0x86b   : > { %v2032_v55 = vpop.xlane.xlu0 %2031  ;;  %3198 = vrcp.f32 %v2029_v53 }
 0x86c   : > { %3200 = vrcp.f32 %v2032_v55 }
 0x86f   : > { %v2035_v23 = vpop.xlane.xlu0 %2034 }
 0x870   : > { %3202 = vrcp.f32 %v2035_v23 }
 0x872   : > { %v2038_v27 = vpop.xlane.xlu1 %2037  ;;  %v3197_v9 = vpop.eup %3196 }
 0x873   : > { %3204 = vrcp.f32 %v2038_v27 }
 0x874   : > { %v2041_v57 = vpop.xlane.xlu0 %2040 }
 0x875   : > { %3206 = vrcp.f32 %v2041_v57  ;;  %v3199_v28 = vpop.eup %3198 }
 0x876   : > { %v2044_v61 = vpop.xlane.xlu1 %2043  ;;  %v3201_v62 = vpop.eup %3200 }
 0x877   : > { %3208 = vrcp.f32 %v2044_v61 }
 0x878   : > { %v2047_v63 = vpop.xlane.xlu0 %2046 }
 0x879   : > { %3210 = vrcp.f32 %v2047_v63 }
 0x87a   : > { %v3203_v49 = vpop.eup %3202 }
 0x87d   : > { %v3205_v43 = vpop.eup %3204 }
 0x87f   : > { %v3207_v5 = vpop.eup %3206 }
 0x881   : > { %v3209_v18 = vpop.eup %3208 }
 0x883   : > { %v3211_v2 = vpop.eup %3210 }
 0x8ba   : > { %v2858_v26 = vpop.f32.mrb[32].mxu1 }
 0x8bb   : > { %v2110_v58 = vpop.f32.mrb[33].mxu1  ;;  %v2151_v16 = vmul.f32 %v3201_v62, %v2858_v26 }
 0x8bc   : > { %v2149_v25 = vmul.f32 %v3197_v9, %v2110_v58  ;;  %v2859_v52 = vpop.f32.mrb[34].mxu1 }
 0x8bd   : > { %v2113_v3 = vpop.f32.mrb[35].mxu1  ;;  %v2152_v17 = vmul.f32 %v3203_v49, %v2859_v52 }
 0x8be   : > { %v2150_v1 = vmul.f32 %v3199_v28, %v2113_v3  ;;  %2872 = vmatprep.mubr.msk.f32.mxu1 %vm690_vm0, %v2149_v25 }
 0x8c0   : > { %2873 = vmatmul.mubr.msk.f32.vlgmr.msra.gmra.mrb[28].mxu1 %vm690_vm0, %v2150_v1 }
 0x8c1   : > { %2875 = vmatprep.mubr.msk.f32.mxu1 %vm690_vm0, %v2151_v16 }
 0x8c2   : > { %v2862_v60 = vpop.f32.mrb[36].mxu1 }
 0x8c3   : > { %v2126_v38 = vpop.f32.mrb[37].mxu1  ;;  %v2155_v20 = vmul.f32 %v3209_v18, %v2862_v60 }
 0x8c4   : > { %v2153_v47 = vmul.f32 %v3205_v43, %v2126_v38  ;;  %v2863_v39 = vpop.f32.mrb[38].mxu1  ;;  %2876 = vmatmul.mubr.msk.f32.gmra.mrb[30].mxu1 %vm690_vm0, %v2152_v17 }
 0x8c5   : > { %v2129_v34 = vpop.f32.mrb[39].mxu1  ;;  %v2156_v21 = vmul.f32 %v3211_v2, %v2863_v39 }
 0x8c6   : > { %v2154_v19 = vmul.f32 %v3207_v5, %v2129_v34  ;;  %2878 = vmatprep.mubr.msk.f32.mxu1 %vm690_vm0, %v2153_v47 }
 0x8c8   : > { %2879 = vmatmul.mubr.msk.f32.gmra.mrb[24].mxu1 %vm690_vm0, %v2154_v19 }
 0x8c9   : > { %2881 = vmatprep.mubr.msk.f32.mxu1 %vm690_vm0, %v2155_v20 }
 0x8cc   : > { %2882 = vmatmul.mubr.msk.f32.gmra.mrb[26].mxu1 %vm690_vm0, %v2156_v21 }
 0x993   : > { %v2874_v22 = vpop.f32.mrb[28].mxu1 }
 0x994   : > { %v2920_v33 = vadd.f32 %v2874_v22, %v3946_v30  ;;  %v2251_v4 = vpop.f32.mrb[29].mxu1 }
 0x995   : > { %v2921_v37 = vadd.f32 %v2251_v4, %v3948_v31 }
 0x996   : > { %2299 = vst [vmem:[%s273_s29 + $0x8] sm:$0xff] %v2920_v33 }
 0x997   : > { %2298 = vst [vmem:[%s273_s29] sm:$0xff] %v2921_v37  ;;  %v2877_v42 = vpop.f32.mrb[30].mxu1 }
 0x998   : > { %v2922_v50 = vadd.f32 %v2877_v42, %v3950_v32  ;;  %v2261_v51 = vpop.f32.mrb[31].mxu1 }
 0x999   : > { %v2923_v0 = vadd.f32 %v2261_v51, %v3952_v36 }
 0x99a   : > { %2301 = vst [vmem:[%s273_s29 + $0x18] sm:$0xff] %v2922_v50 }
 0x99b   : > { %2300 = vst [vmem:[%s273_s29 + $0x10] sm:$0xff] %v2923_v0  ;;  %v2880_v41 = vpop.f32.mrb[24].mxu1 }
 0x99c   : > { %2303 = vst [vmem:[%s273_s29 + $0x28] sm:$0xff] %v2880_v41  ;;  %v2271_v30 = vpop.f32.mrb[25].mxu1 }
 0x99d   : > { %2302 = vst [vmem:[%s273_s29 + $0x20] sm:$0xff] %v2271_v30 }
 0x99f   : > { %v2883_v31 = vpop.f32.mrb[26].mxu1 }
 0x9a0   : > { %2305 = vst [vmem:[%s273_s29 + $0x38] sm:$0xff] %v2883_v31  ;;  %v2281_v32 = vpop.f32.mrb[27].mxu1 }
 0x9a1   : > { %2304 = vst [vmem:[%s273_s29 + $0x30] sm:$0xff] %v2281_v32 }
 0x9a2   : > { %3339 = shalt.err (!%p3336_p0)
}
 0x9a3   : > { %s3340_s7 = scalar_lea.hbm %s4131_s14, 1024  ;;  %s3344_s25 = scalar_lea.hbm %s4184_s4, 2048 }
 0x9a4   : > { %p3341_p4 = scmp.ne.s32.totalorder %s4131_s14, %s3340_s7  ;;  %p3345_p12 = scmp.lt.u32.totalorder %s4131_s14, %s4184_s4 }
 0x9a5   : > { %p3346_p1 = scmp.lt.u32.totalorder %s3344_s25, %s3340_s7  ;;  %p3348_p13 = scmp.lt.u32.totalorder %s3340_s7, %s4131_s14 }
 0x9a6   : > { %p3342_p8 = pnand %p3341_p4, %p3615_p3 }
 0x9a7   : > { %p3347_p7 = por %p3346_p1, %p3345_p12 }
 0x9a8   : > { %p3343_p2 = pneg %p3342_p8 }
 0x9a9   : > { %p3349_p6 = por %p3348_p13, %p3347_p7 }
 0x9ab   : > { %p3350_p10 = pnand %p3349_p6, %p3343_p2 }
 0x9ad   : > { %3353 = shalt.err (!%p3350_p10)
}
 0x9ae   : > { %s3431_s29 = smov 128   ;;  %s3432_s22 = smov 8  }
 0x9af   : > { %2958 = dma.vmem_to_hbm [thread:$0]  (%p3615_p3), %s4126_s6, 1024, %s4131_s14, %s2307_s24, %s3431_s29, %s3431_s29, %s3432_s22  }
 0x9b0 PF: > { %s2337_s5 = sand.u32 1, %s3396_s15   ;;  %p4209_p11 = scmp.ne.s32.totalorder %s4195_s26, 0 }
 0x9b1   : > { %p4210_p5 = scmp.ge.s32.totalorder %s3416_s20, 2  ;;  %s2338_s13 = scalar_lea.sflag [#allocation7], %s2337_s5 }
 0x9b3   : > { %p2975_p9 = pnand %p4210_p5, %p4209_p11 }
 0x9b5   : > { %3391 = dma.done.wait (!%p2975_p9), %s2338_s13, 1024  }
 0x9b6   : > { %3393 = vsyncadd (!%p2975_p9), %s2338_s13, 4294966272  ;;  %s22_s20 = sadd.s32 1, %s3416_s20   ;;  %s4211_s15 = smov %s3400_s16 }
 0x9b7   : > { %p19_p0 = scmp.ge.s32.totalorder %s22_s20, 4   ;;  %s4212_s16 = smov %s3404_s17 }
 0x9b8   : > { %s4213_s17 = smov %s3624_s10  ;;  %s4214_s18 = smov %s3412_s19 }
 0x9b9   : > { %s4215_s19 = smov %s4217_s1  ;;  %21 = sbr.rel (!%p19_p0) target bundleno = 10 (0xa), region = 98 }
 0x9c0   :  { %2343 = vsyncpa [#allocation6], 1 }
 0x9c1   :  { %2345 = vsyncpa [#allocation6 + $0x1], 1 }
 0x9c2   :  { %2346 = vsyncpa [#allocation9], 1 }
 0x9c3   :  { %2347 = vsyncpa [#allocation12], 1 }
 0x9c4   :  { %2348 = vsyncpa [#allocation7], 1 }
 0x9c5   :  { %2350 = vsyncpa [#allocation7 + $0x1], 1 }

</bundles_post_ra>
